<compile_context>
chip_gen: v7x
topology: tpu7x:2x2x1
jax: 0.10.0
libtpu: 0.0.40
codegen_flags: <defaults>
</compile_context>

<pallas_src>
import jax
import jax.numpy as jnp
import numpy as np
from jax import lax
from jax.experimental import pallas as pl
from jax.experimental.pallas import tpu as pltpu

# ----------------------------- model config ---------------------------------
NUM_TOKENS = 5
NUM_LAYERS = 2
HID = 32                      # hidden_dim
OUT_DIM = NUM_TOKENS - 1      # fc output = num_tokens - 1
BATCH = 2
SEQ = 8
TB = SEQ * BATCH              # total (t, b) rows, time-major: row r = t*BATCH + b


# ------------------------------ Pallas kernel -------------------------------
def lstm_kernel(tok_ref, emb_ih0_ref, wih_ref, whh_ref, b_ref, wfc_ref, bfc_ref,
                out_ref, hn_ref, cn_ref, h_sc):
    """Embedding + L-layer LSTM + FC in one invocation, layer-major schedule.

    h_sc / out_ref rows are time-major: row r = t*BATCH + b.
    """
    # One-hot for all (t, b) rows at once (gather-free embedding lookup, stays on the MXU).
    lane_ids = lax.broadcasted_iota(jnp.int32, (TB, NUM_TOKENS), 1)
    onehot = (tok_ref[...] == lane_ids).astype(jnp.float32)            # (T*B, NT)

    for l in range(NUM_LAYERS):
        # Input-gate contribution for ALL timesteps with ONE matmul; gate bias folded in
        # here (one add per layer instead of per step).
        bias = jnp.broadcast_to(b_ref[l], (TB, 4 * HID))                # (T*B, 4H)
        if l == 0:
            # emb @ W_ih^T[0] was pre-folded host-side into emb_ih0 (NUM_TOKENS, 4H).
            ig_all = jnp.dot(onehot, emb_ih0_ref[...],
                             preferred_element_type=jnp.float32) + bias
        else:
            # Previous layer's h for every timestep is staged (time-major) in h_sc.
            ig_all = jnp.dot(h_sc[...], wih_ref[l],
                             preferred_element_type=jnp.float32) + bias
        whh = whh_ref[l]                                                # (H, 4H)

        # Recurrence: only the (B, H) @ (H, 4H) hidden matmul remains per step.
        h = jnp.zeros((BATCH, HID), jnp.float32)
        c = jnp.zeros((BATCH, HID), jnp.float32)
        for t in range(SEQ):                                            # static unroll
            gates = (ig_all[t * BATCH:(t + 1) * BATCH, :]
                     + jnp.dot(h, whh, preferred_element_type=jnp.float32))
            # One sigmoid pass over the whole (B, 4H) vreg; slice i/f/o out of the
            # activated result.  PyTorch gate order is [i, f, g, o].
            sig = jax.nn.sigmoid(gates)
            i_g = sig[:, 0 * HID:1 * HID]
            f_g = sig[:, 1 * HID:2 * HID]
            o_g = sig[:, 3 * HID:4 * HID]
            g_g = jnp.tanh(gates[:, 2 * HID:3 * HID])
            c = f_g * c + i_g * g_g
            h = o_g * jnp.tanh(c)
            # Single contiguous (B, H) staging store per timestep (time-major rows).
            # Safe to overwrite: the next layer's ig_all is fully materialized before
            # its recurrence writes back into h_sc.
            h_sc[t * BATCH:(t + 1) * BATCH, :] = h

        hn_ref[l] = h
        cn_ref[l] = c

    # Single batched FC projection + single output store: (T*B, H) @ (H, OUT) + b_fc.
    out_ref[...] = (jnp.dot(h_sc[...], wfc_ref[...],
                            preferred_element_type=jnp.float32) + bfc_ref[...])


def lstm_forward_pallas(x_tokens, emb_ih0, wih_T, whh_T, bias, wfc_T, bfc):
    """Forward pass of LSTMModel.

    x_tokens: (B, T) int32 token ids.
    Returns (out (B, T, OUT_DIM), (h_n (L, B, H), c_n (L, B, H))).
    """
    B, T = x_tokens.shape
    # Time-major flat token ids (row r = t*B + b) — tiny layout plumbing in the wrapper.
    tok_tm = x_tokens.T.reshape(T * B, 1).astype(jnp.int32)
    vmem = pl.BlockSpec(memory_space=pltpu.MemorySpace.VMEM)

    out_tm, h_n, c_n = pl.pallas_call(
        lstm_kernel,
        out_shape=(
            jax.ShapeDtypeStruct((T * B, OUT_DIM), jnp.float32),
            jax.ShapeDtypeStruct((NUM_LAYERS, B, HID), jnp.float32),
            jax.ShapeDtypeStruct((NUM_LAYERS, B, HID), jnp.float32),
        ),
        in_specs=[vmem] * 7,
        out_specs=(vmem, vmem, vmem),
        scratch_shapes=[pltpu.VMEM((T * B, HID), jnp.float32)],   # per-layer h staging
    )(tok_tm, emb_ih0, wih_T, whh_T, bias, wfc_T, bfc)

    # Kernel rows are time-major; reordering the tiny (T, B, O) result is negligible.
    out = out_tm.reshape(T, B, OUT_DIM).transpose(1, 0, 2)
    return out, (h_n, c_n)


# ------------------------------ JAX reference --------------------------------
def lstm_forward_ref(x_tokens, emb_table, wih_T, whh_T, bias, wfc_T, bfc):
    x = jnp.take(emb_table, x_tokens, axis=0)  # (B, T, H)
    B, T, H = x.shape
    L = wih_T.shape[0]
    h = jnp.zeros((L, B, H), jnp.float32)
    c = jnp.zeros((L, B, H), jnp.float32)
    outs = []
    for t in range(T):
        xt = x[:, t]
        for l in range(L):
            gates = xt @ wih_T[l] + h[l] @ whh_T[l] + bias[l]
            i_g = jax.nn.sigmoid(gates[:, 0 * H:1 * H])
            f_g = jax.nn.sigmoid(gates[:, 1 * H:2 * H])
            g_g = jnp.tanh(gates[:, 2 * H:3 * H])
            o_g = jax.nn.sigmoid(gates[:, 3 * H:4 * H])
            c = c.at[l].set(f_g * c[l] + i_g * g_g)
            h = h.at[l].set(o_g * jnp.tanh(c[l]))
            xt = h[l]
        outs.append(xt @ wfc_T + bfc)
    return jnp.stack(outs, axis=1), (h, c)


# --------------------------------- main --------------------------------------
if __name__ == "__main__":
    key = jax.random.PRNGKey(0)
    k_tok, k_emb, k_wih, k_whh, k_bih, k_bhh, k_wfc, k_bfc = jax.random.split(key, 8)

    scale = 1.0 / np.sqrt(HID)
    emb_table = jax.random.normal(k_emb, (NUM_TOKENS, HID), jnp.float32)
    # Per-layer LSTM weights, stored pre-transposed: W_ih^T (L, H, 4H), W_hh^T (L, H, 4H).
    wih_T = jax.random.uniform(k_wih, (NUM_LAYERS, HID, 4 * HID), jnp.float32,
                               -scale, scale)
    whh_T = jax.random.uniform(k_whh, (NUM_LAYERS, HID, 4 * HID), jnp.float32,
                               -scale, scale)
    b_ih = jax.random.uniform(k_bih, (NUM_LAYERS, 1, 4 * HID), jnp.float32, -scale, scale)
    b_hh = jax.random.uniform(k_bhh, (NUM_LAYERS, 1, 4 * HID), jnp.float32, -scale, scale)
    bias = b_ih + b_hh                                           # combined gate bias
    # One-time param prep: fold the embedding table through layer-0's input projection.
    emb_ih0 = emb_table @ wih_T[0]                               # (NUM_TOKENS, 4H)
    # fc: Linear(H, NUM_TOKENS-1), stored pre-transposed (H, OUT_DIM), bias (1, OUT_DIM).
    wfc_T = jax.random.uniform(k_wfc, (HID, OUT_DIM), jnp.float32, -scale, scale)
    bfc = jax.random.uniform(k_bfc, (1, OUT_DIM), jnp.float32, -scale, scale)

    # input token ids (B, T)
    x_tokens = jax.random.randint(k_tok, (BATCH, SEQ), 0, NUM_TOKENS, jnp.int32)

    out, (h_n, c_n) = lstm_forward_pallas(x_tokens, emb_ih0, wih_T, whh_T, bias,
                                          wfc_T, bfc)
    jax.block_until_ready(out)
    jax.block_until_ready(h_n)
    jax.block_until_ready(c_n)

    out_ref, (h_ref, c_ref) = lstm_forward_ref(x_tokens, emb_table, wih_T, whh_T,
                                               bias, wfc_T, bfc)
    np.testing.assert_allclose(np.asarray(out), np.asarray(out_ref), rtol=1e-4, atol=1e-5)
    np.testing.assert_allclose(np.asarray(h_n), np.asarray(h_ref), rtol=1e-4, atol=1e-5)
    np.testing.assert_allclose(np.asarray(c_n), np.asarray(c_ref), rtol=1e-4, atol=1e-5)

    # TODO(synk): the stochastic `decode` sampling loop (Categorical sampling / guide-sequence
    # mixing) is host-side control flow and is not kernelized.
    print("KERNEL_OK")
</pallas_src>

<mosaic_0001>
module attributes {stable_mosaic.version = 11 : i64} {
  func.func @lstm_kernel(%arg0: memref<16x1xi32, #tpu.memory_space<vmem>>, %arg1: memref<5x128xf32, #tpu.memory_space<vmem>>, %arg2: memref<2x32x128xf32, #tpu.memory_space<vmem>>, %arg3: memref<2x32x128xf32, #tpu.memory_space<vmem>>, %arg4: memref<2x1x128xf32, #tpu.memory_space<vmem>>, %arg5: memref<32x4xf32, #tpu.memory_space<vmem>>, %arg6: memref<1x4xf32, #tpu.memory_space<vmem>>, %arg7: memref<16x4xf32, #tpu.memory_space<vmem>>, %arg8: memref<2x2x32xf32, #tpu.memory_space<vmem>>, %arg9: memref<2x2x32xf32, #tpu.memory_space<vmem>>, %arg10: memref<16x32xf32, #tpu.memory_space<vmem>>) attributes {dimension_semantics = [], scalar_prefetch = 0 : i64, scratch_operands = 1 : i64, tpu.core_type = #tpu.core_type<tc>} {
    %0 = tpu.iota {dimensions = array<i32: 1>} : vector<16x5xi32>
    %c0 = arith.constant 0 : index
    %c0_0 = arith.constant 0 : index
    %1 = vector.load %arg0[%c0, %c0_0] : memref<16x1xi32, #tpu.memory_space<vmem>>, vector<16x1xi32>
    %2 = vector.broadcast %1 : vector<16x1xi32> to vector<16x5xi32>
    %3 = arith.cmpi eq, %2, %0 : vector<16x5xi32>
    %4 = arith.extui %3 : vector<16x5xi1> to vector<16x5xi32>
    %5 = arith.sitofp %4 : vector<16x5xi32> to vector<16x5xf32>
    %c0_1 = arith.constant 0 : index
    %c0_2 = arith.constant 0 : index
    %c0_3 = arith.constant 0 : index
    %6 = vector.load %arg4[%c0_1, %c0_2, %c0_3] : memref<2x1x128xf32, #tpu.memory_space<vmem>>, vector<1x1x128xf32>
    %7 = vector.shape_cast %6 : vector<1x1x128xf32> to vector<1x128xf32>
    %8 = vector.shape_cast %7 : vector<1x128xf32> to vector<1x128xf32>
    %9 = vector.broadcast %8 : vector<1x128xf32> to vector<16x128xf32>
    %c0_4 = arith.constant 0 : index
    %c0_5 = arith.constant 0 : index
    %10 = vector.load %arg1[%c0_4, %c0_5] : memref<5x128xf32, #tpu.memory_space<vmem>>, vector<5x128xf32>
    %cst = arith.constant dense<0.000000e+00> : vector<16x128xf32>
    %11 = tpu.matmul %5, %10, %cst {dimension_numbers = #tpu.dot_dimension_numbers<[1], [0], [0], [1], [0, 0, 1, 1], [], []>} : vector<16x5xf32>, vector<5x128xf32>, vector<16x128xf32> -> vector<16x128xf32>
    %12 = arith.addf %11, %9 : vector<16x128xf32>
    %c0_6 = arith.constant 0 : index
    %c0_7 = arith.constant 0 : index
    %c0_8 = arith.constant 0 : index
    %13 = vector.load %arg3[%c0_6, %c0_7, %c0_8] : memref<2x32x128xf32, #tpu.memory_space<vmem>>, vector<1x32x128xf32>
    %14 = vector.shape_cast %13 : vector<1x32x128xf32> to vector<32x128xf32>
    %cst_9 = arith.constant 0.000000e+00 : f32
    %15 = vector.broadcast %cst_9 : f32 to vector<2x32xf32>
    %cst_10 = arith.constant 0.000000e+00 : f32
    %16 = vector.broadcast %cst_10 : f32 to vector<2x32xf32>
    %17 = vector.extract_strided_slice %12 {offsets = [0, 0], sizes = [2, 128], strides = [1, 1]} : vector<16x128xf32> to vector<2x128xf32>
    %cst_11 = arith.constant dense<0.000000e+00> : vector<2x128xf32>
    %18 = tpu.matmul %15, %14, %cst_11 {dimension_numbers = #tpu.dot_dimension_numbers<[1], [0], [0], [1], [0, 0, 1, 1], [], []>} : vector<2x32xf32>, vector<32x128xf32>, vector<2x128xf32> -> vector<2x128xf32>
    %19 = arith.addf %17, %18 : vector<2x128xf32>
    %20 = arith.negf %19 : vector<2x128xf32>
    %21 = math.exp %20 : vector<2x128xf32>
    %cst_12 = arith.constant 1.000000e+00 : f32
    %22 = vector.broadcast %cst_12 : f32 to vector<2x128xf32>
    %23 = arith.addf %22, %21 : vector<2x128xf32>
    %24 = arith.divf %22, %23 : vector<2x128xf32>
    %25 = vector.extract_strided_slice %24 {offsets = [0, 0], sizes = [2, 32], strides = [1, 1]} : vector<2x128xf32> to vector<2x32xf32>
    %26 = vector.extract_strided_slice %24 {offsets = [0, 32], sizes = [2, 32], strides = [1, 1]} : vector<2x128xf32> to vector<2x32xf32>
    %27 = vector.extract_strided_slice %24 {offsets = [0, 96], sizes = [2, 32], strides = [1, 1]} : vector<2x128xf32> to vector<2x32xf32>
    %28 = vector.extract_strided_slice %19 {offsets = [0, 64], sizes = [2, 32], strides = [1, 1]} : vector<2x128xf32> to vector<2x32xf32>
    %29 = math.tanh %28 : vector<2x32xf32>
    %30 = arith.mulf %26, %16 : vector<2x32xf32>
    %31 = arith.mulf %25, %29 : vector<2x32xf32>
    %32 = arith.addf %30, %31 : vector<2x32xf32>
    %33 = math.tanh %32 : vector<2x32xf32>
    %34 = arith.mulf %27, %33 : vector<2x32xf32>
    %c0_13 = arith.constant 0 : index
    %c0_14 = arith.constant 0 : index
    %35 = vector.load %arg10[%c0_13, %c0_14] : memref<16x32xf32, #tpu.memory_space<vmem>>, vector<2x32xf32>
    tpu.vector_store %arg10[%c0_13, %c0_14], %34 {strides = array<i32>} : memref<16x32xf32, #tpu.memory_space<vmem>>, vector<2x32xf32>,
    %36 = vector.extract_strided_slice %12 {offsets = [2, 0], sizes = [2, 128], strides = [1, 1]} : vector<16x128xf32> to vector<2x128xf32>
    %cst_15 = arith.constant dense<0.000000e+00> : vector<2x128xf32>
    %37 = tpu.matmul %34, %14, %cst_15 {dimension_numbers = #tpu.dot_dimension_numbers<[1], [0], [0], [1], [0, 0, 1, 1], [], []>} : vector<2x32xf32>, vector<32x128xf32>, vector<2x128xf32> -> vector<2x128xf32>
    %38 = arith.addf %36, %37 : vector<2x128xf32>
    %39 = arith.negf %38 : vector<2x128xf32>
    %40 = math.exp %39 : vector<2x128xf32>
    %cst_16 = arith.constant 1.000000e+00 : f32
    %41 = vector.broadcast %cst_16 : f32 to vector<2x128xf32>
    %42 = arith.addf %41, %40 : vector<2x128xf32>
    %43 = arith.divf %41, %42 : vector<2x128xf32>
    %44 = vector.extract_strided_slice %43 {offsets = [0, 0], sizes = [2, 32], strides = [1, 1]} : vector<2x128xf32> to vector<2x32xf32>
    %45 = vector.extract_strided_slice %43 {offsets = [0, 32], sizes = [2, 32], strides = [1, 1]} : vector<2x128xf32> to vector<2x32xf32>
    %46 = vector.extract_strided_slice %43 {offsets = [0, 96], sizes = [2, 32], strides = [1, 1]} : vector<2x128xf32> to vector<2x32xf32>
    %47 = vector.extract_strided_slice %38 {offsets = [0, 64], sizes = [2, 32], strides = [1, 1]} : vector<2x128xf32> to vector<2x32xf32>
    %48 = math.tanh %47 : vector<2x32xf32>
    %49 = arith.mulf %45, %32 : vector<2x32xf32>
    %50 = arith.mulf %44, %48 : vector<2x32xf32>
    %51 = arith.addf %49, %50 : vector<2x32xf32>
    %52 = math.tanh %51 : vector<2x32xf32>
    %53 = arith.mulf %46, %52 : vector<2x32xf32>
    %c2 = arith.constant 2 : index
    %c0_17 = arith.constant 0 : index
    %54 = vector.load %arg10[%c2, %c0_17] : memref<16x32xf32, #tpu.memory_space<vmem>>, vector<2x32xf32>
    tpu.vector_store %arg10[%c2, %c0_17], %53 {strides = array<i32>} : memref<16x32xf32, #tpu.memory_space<vmem>>, vector<2x32xf32>,
    %55 = vector.extract_strided_slice %12 {offsets = [4, 0], sizes = [2, 128], strides = [1, 1]} : vector<16x128xf32> to vector<2x128xf32>
    %cst_18 = arith.constant dense<0.000000e+00> : vector<2x128xf32>
    %56 = tpu.matmul %53, %14, %cst_18 {dimension_numbers = #tpu.dot_dimension_numbers<[1], [0], [0], [1], [0, 0, 1, 1], [], []>} : vector<2x32xf32>, vector<32x128xf32>, vector<2x128xf32> -> vector<2x128xf32>
    %57 = arith.addf %55, %56 : vector<2x128xf32>
    %58 = arith.negf %57 : vector<2x128xf32>
    %59 = math.exp %58 : vector<2x128xf32>
    %cst_19 = arith.constant 1.000000e+00 : f32
    %60 = vector.broadcast %cst_19 : f32 to vector<2x128xf32>
    %61 = arith.addf %60, %59 : vector<2x128xf32>
    %62 = arith.divf %60, %61 : vector<2x128xf32>
    %63 = vector.extract_strided_slice %62 {offsets = [0, 0], sizes = [2, 32], strides = [1, 1]} : vector<2x128xf32> to vector<2x32xf32>
    %64 = vector.extract_strided_slice %62 {offsets = [0, 32], sizes = [2, 32], strides = [1, 1]} : vector<2x128xf32> to vector<2x32xf32>
    %65 = vector.extract_strided_slice %62 {offsets = [0, 96], sizes = [2, 32], strides = [1, 1]} : vector<2x128xf32> to vector<2x32xf32>
    %66 = vector.extract_strided_slice %57 {offsets = [0, 64], sizes = [2, 32], strides = [1, 1]} : vector<2x128xf32> to vector<2x32xf32>
    %67 = math.tanh %66 : vector<2x32xf32>
    %68 = arith.mulf %64, %51 : vector<2x32xf32>
    %69 = arith.mulf %63, %67 : vector<2x32xf32>
    %70 = arith.addf %68, %69 : vector<2x32xf32>
    %71 = math.tanh %70 : vector<2x32xf32>
    %72 = arith.mulf %65, %71 : vector<2x32xf32>
    %c4 = arith.constant 4 : index
    %c0_20 = arith.constant 0 : index
    %73 = vector.load %arg10[%c4, %c0_20] : memref<16x32xf32, #tpu.memory_space<vmem>>, vector<2x32xf32>
    tpu.vector_store %arg10[%c4, %c0_20], %72 {strides = array<i32>} : memref<16x32xf32, #tpu.memory_space<vmem>>, vector<2x32xf32>,
    %74 = vector.extract_strided_slice %12 {offsets = [6, 0], sizes = [2, 128], strides = [1, 1]} : vector<16x128xf32> to vector<2x128xf32>
    %cst_21 = arith.constant dense<0.000000e+00> : vector<2x128xf32>
    %75 = tpu.matmul %72, %14, %cst_21 {dimension_numbers = #tpu.dot_dimension_numbers<[1], [0], [0], [1], [0, 0, 1, 1], [], []>} : vector<2x32xf32>, vector<32x128xf32>, vector<2x128xf32> -> vector<2x128xf32>
    %76 = arith.addf %74, %75 : vector<2x128xf32>
    %77 = arith.negf %76 : vector<2x128xf32>
    %78 = math.exp %77 : vector<2x128xf32>
    %cst_22 = arith.constant 1.000000e+00 : f32
    %79 = vector.broadcast %cst_22 : f32 to vector<2x128xf32>
    %80 = arith.addf %79, %78 : vector<2x128xf32>
    %81 = arith.divf %79, %80 : vector<2x128xf32>
    %82 = vector.extract_strided_slice %81 {offsets = [0, 0], sizes = [2, 32], strides = [1, 1]} : vector<2x128xf32> to vector<2x32xf32>
    %83 = vector.extract_strided_slice %81 {offsets = [0, 32], sizes = [2, 32], strides = [1, 1]} : vector<2x128xf32> to vector<2x32xf32>
    %84 = vector.extract_strided_slice %81 {offsets = [0, 96], sizes = [2, 32], strides = [1, 1]} : vector<2x128xf32> to vector<2x32xf32>
    %85 = vector.extract_strided_slice %76 {offsets = [0, 64], sizes = [2, 32], strides = [1, 1]} : vector<2x128xf32> to vector<2x32xf32>
    %86 = math.tanh %85 : vector<2x32xf32>
    %87 = arith.mulf %83, %70 : vector<2x32xf32>
    %88 = arith.mulf %82, %86 : vector<2x32xf32>
    %89 = arith.addf %87, %88 : vector<2x32xf32>
    %90 = math.tanh %89 : vector<2x32xf32>
    %91 = arith.mulf %84, %90 : vector<2x32xf32>
    %c6 = arith.constant 6 : index
    %c0_23 = arith.constant 0 : index
    %92 = vector.load %arg10[%c6, %c0_23] : memref<16x32xf32, #tpu.memory_space<vmem>>, vector<2x32xf32>
    tpu.vector_store %arg10[%c6, %c0_23], %91 {strides = array<i32>} : memref<16x32xf32, #tpu.memory_space<vmem>>, vector<2x32xf32>,
    %93 = vector.extract_strided_slice %12 {offsets = [8, 0], sizes = [2, 128], strides = [1, 1]} : vector<16x128xf32> to vector<2x128xf32>
    %cst_24 = arith.constant dense<0.000000e+00> : vector<2x128xf32>
    %94 = tpu.matmul %91, %14, %cst_24 {dimension_numbers = #tpu.dot_dimension_numbers<[1], [0], [0], [1], [0, 0, 1, 1], [], []>} : vector<2x32xf32>, vector<32x128xf32>, vector<2x128xf32> -> vector<2x128xf32>
    %95 = arith.addf %93, %94 : vector<2x128xf32>
    %96 = arith.negf %95 : vector<2x128xf32>
    %97 = math.exp %96 : vector<2x128xf32>
    %cst_25 = arith.constant 1.000000e+00 : f32
    %98 = vector.broadcast %cst_25 : f32 to vector<2x128xf32>
    %99 = arith.addf %98, %97 : vector<2x128xf32>
    %100 = arith.divf %98, %99 : vector<2x128xf32>
    %101 = vector.extract_strided_slice %100 {offsets = [0, 0], sizes = [2, 32], strides = [1, 1]} : vector<2x128xf32> to vector<2x32xf32>
    %102 = vector.extract_strided_slice %100 {offsets = [0, 32], sizes = [2, 32], strides = [1, 1]} : vector<2x128xf32> to vector<2x32xf32>
    %103 = vector.extract_strided_slice %100 {offsets = [0, 96], sizes = [2, 32], strides = [1, 1]} : vector<2x128xf32> to vector<2x32xf32>
    %104 = vector.extract_strided_slice %95 {offsets = [0, 64], sizes = [2, 32], strides = [1, 1]} : vector<2x128xf32> to vector<2x32xf32>
    %105 = math.tanh %104 : vector<2x32xf32>
    %106 = arith.mulf %102, %89 : vector<2x32xf32>
    %107 = arith.mulf %101, %105 : vector<2x32xf32>
    %108 = arith.addf %106, %107 : vector<2x32xf32>
    %109 = math.tanh %108 : vector<2x32xf32>
    %110 = arith.mulf %103, %109 : vector<2x32xf32>
    %c8 = arith.constant 8 : index
    %c0_26 = arith.constant 0 : index
    %111 = vector.load %arg10[%c8, %c0_26] : memref<16x32xf32, #tpu.memory_space<vmem>>, vector<2x32xf32>
    tpu.vector_store %arg10[%c8, %c0_26], %110 {strides = array<i32>} : memref<16x32xf32, #tpu.memory_space<vmem>>, vector<2x32xf32>,
    %112 = vector.extract_strided_slice %12 {offsets = [10, 0], sizes = [2, 128], strides = [1, 1]} : vector<16x128xf32> to vector<2x128xf32>
    %cst_27 = arith.constant dense<0.000000e+00> : vector<2x128xf32>
    %113 = tpu.matmul %110, %14, %cst_27 {dimension_numbers = #tpu.dot_dimension_numbers<[1], [0], [0], [1], [0, 0, 1, 1], [], []>} : vector<2x32xf32>, vector<32x128xf32>, vector<2x128xf32> -> vector<2x128xf32>
    %114 = arith.addf %112, %113 : vector<2x128xf32>
    %115 = arith.negf %114 : vector<2x128xf32>
    %116 = math.exp %115 : vector<2x128xf32>
    %cst_28 = arith.constant 1.000000e+00 : f32
    %117 = vector.broadcast %cst_28 : f32 to vector<2x128xf32>
    %118 = arith.addf %117, %116 : vector<2x128xf32>
    %119 = arith.divf %117, %118 : vector<2x128xf32>
    %120 = vector.extract_strided_slice %119 {offsets = [0, 0], sizes = [2, 32], strides = [1, 1]} : vector<2x128xf32> to vector<2x32xf32>
    %121 = vector.extract_strided_slice %119 {offsets = [0, 32], sizes = [2, 32], strides = [1, 1]} : vector<2x128xf32> to vector<2x32xf32>
    %122 = vector.extract_strided_slice %119 {offsets = [0, 96], sizes = [2, 32], strides = [1, 1]} : vector<2x128xf32> to vector<2x32xf32>
    %123 = vector.extract_strided_slice %114 {offsets = [0, 64], sizes = [2, 32], strides = [1, 1]} : vector<2x128xf32> to vector<2x32xf32>
    %124 = math.tanh %123 : vector<2x32xf32>
    %125 = arith.mulf %121, %108 : vector<2x32xf32>
    %126 = arith.mulf %120, %124 : vector<2x32xf32>
    %127 = arith.addf %125, %126 : vector<2x32xf32>
    %128 = math.tanh %127 : vector<2x32xf32>
    %129 = arith.mulf %122, %128 : vector<2x32xf32>
    %c10 = arith.constant 10 : index
    %c0_29 = arith.constant 0 : index
    %130 = vector.load %arg10[%c10, %c0_29] : memref<16x32xf32, #tpu.memory_space<vmem>>, vector<2x32xf32>
    tpu.vector_store %arg10[%c10, %c0_29], %129 {strides = array<i32>} : memref<16x32xf32, #tpu.memory_space<vmem>>, vector<2x32xf32>,
    %131 = vector.extract_strided_slice %12 {offsets = [12, 0], sizes = [2, 128], strides = [1, 1]} : vector<16x128xf32> to vector<2x128xf32>
    %cst_30 = arith.constant dense<0.000000e+00> : vector<2x128xf32>
    %132 = tpu.matmul %129, %14, %cst_30 {dimension_numbers = #tpu.dot_dimension_numbers<[1], [0], [0], [1], [0, 0, 1, 1], [], []>} : vector<2x32xf32>, vector<32x128xf32>, vector<2x128xf32> -> vector<2x128xf32>
    %133 = arith.addf %131, %132 : vector<2x128xf32>
    %134 = arith.negf %133 : vector<2x128xf32>
    %135 = math.exp %134 : vector<2x128xf32>
    %cst_31 = arith.constant 1.000000e+00 : f32
    %136 = vector.broadcast %cst_31 : f32 to vector<2x128xf32>
    %137 = arith.addf %136, %135 : vector<2x128xf32>
    %138 = arith.divf %136, %137 : vector<2x128xf32>
    %139 = vector.extract_strided_slice %138 {offsets = [0, 0], sizes = [2, 32], strides = [1, 1]} : vector<2x128xf32> to vector<2x32xf32>
    %140 = vector.extract_strided_slice %138 {offsets = [0, 32], sizes = [2, 32], strides = [1, 1]} : vector<2x128xf32> to vector<2x32xf32>
    %141 = vector.extract_strided_slice %138 {offsets = [0, 96], sizes = [2, 32], strides = [1, 1]} : vector<2x128xf32> to vector<2x32xf32>
    %142 = vector.extract_strided_slice %133 {offsets = [0, 64], sizes = [2, 32], strides = [1, 1]} : vector<2x128xf32> to vector<2x32xf32>
    %143 = math.tanh %142 : vector<2x32xf32>
    %144 = arith.mulf %140, %127 : vector<2x32xf32>
    %145 = arith.mulf %139, %143 : vector<2x32xf32>
    %146 = arith.addf %144, %145 : vector<2x32xf32>
    %147 = math.tanh %146 : vector<2x32xf32>
    %148 = arith.mulf %141, %147 : vector<2x32xf32>
    %c12 = arith.constant 12 : index
    %c0_32 = arith.constant 0 : index
    %149 = vector.load %arg10[%c12, %c0_32] : memref<16x32xf32, #tpu.memory_space<vmem>>, vector<2x32xf32>
    tpu.vector_store %arg10[%c12, %c0_32], %148 {strides = array<i32>} : memref<16x32xf32, #tpu.memory_space<vmem>>, vector<2x32xf32>,
    %150 = vector.extract_strided_slice %12 {offsets = [14, 0], sizes = [2, 128], strides = [1, 1]} : vector<16x128xf32> to vector<2x128xf32>
    %cst_33 = arith.constant dense<0.000000e+00> : vector<2x128xf32>
    %151 = tpu.matmul %148, %14, %cst_33 {dimension_numbers = #tpu.dot_dimension_numbers<[1], [0], [0], [1], [0, 0, 1, 1], [], []>} : vector<2x32xf32>, vector<32x128xf32>, vector<2x128xf32> -> vector<2x128xf32>
    %152 = arith.addf %150, %151 : vector<2x128xf32>
    %153 = arith.negf %152 : vector<2x128xf32>
    %154 = math.exp %153 : vector<2x128xf32>
    %cst_34 = arith.constant 1.000000e+00 : f32
    %155 = vector.broadcast %cst_34 : f32 to vector<2x128xf32>
    %156 = arith.addf %155, %154 : vector<2x128xf32>
    %157 = arith.divf %155, %156 : vector<2x128xf32>
    %158 = vector.extract_strided_slice %157 {offsets = [0, 0], sizes = [2, 32], strides = [1, 1]} : vector<2x128xf32> to vector<2x32xf32>
    %159 = vector.extract_strided_slice %157 {offsets = [0, 32], sizes = [2, 32], strides = [1, 1]} : vector<2x128xf32> to vector<2x32xf32>
    %160 = vector.extract_strided_slice %157 {offsets = [0, 96], sizes = [2, 32], strides = [1, 1]} : vector<2x128xf32> to vector<2x32xf32>
    %161 = vector.extract_strided_slice %152 {offsets = [0, 64], sizes = [2, 32], strides = [1, 1]} : vector<2x128xf32> to vector<2x32xf32>
    %162 = math.tanh %161 : vector<2x32xf32>
    %163 = arith.mulf %159, %146 : vector<2x32xf32>
    %164 = arith.mulf %158, %162 : vector<2x32xf32>
    %165 = arith.addf %163, %164 : vector<2x32xf32>
    %166 = math.tanh %165 : vector<2x32xf32>
    %167 = arith.mulf %160, %166 : vector<2x32xf32>
    %c14 = arith.constant 14 : index
    %c0_35 = arith.constant 0 : index
    %168 = vector.load %arg10[%c14, %c0_35] : memref<16x32xf32, #tpu.memory_space<vmem>>, vector<2x32xf32>
    tpu.vector_store %arg10[%c14, %c0_35], %167 {strides = array<i32>} : memref<16x32xf32, #tpu.memory_space<vmem>>, vector<2x32xf32>,
    %c0_36 = arith.constant 0 : index
    %c0_37 = arith.constant 0 : index
    %c0_38 = arith.constant 0 : index
    %169 = vector.load %arg8[%c0_36, %c0_37, %c0_38] : memref<2x2x32xf32, #tpu.memory_space<vmem>>, vector<1x2x32xf32>
    %170 = vector.shape_cast %169 : vector<1x2x32xf32> to vector<2x32xf32>
    %171 = vector.shape_cast %167 : vector<2x32xf32> to vector<1x2x32xf32>
    tpu.vector_store %arg8[%c0_36, %c0_37, %c0_38], %171 {strides = array<i32>} : memref<2x2x32xf32, #tpu.memory_space<vmem>>, vector<1x2x32xf32>,
    %c0_39 = arith.constant 0 : index
    %c0_40 = arith.constant 0 : index
    %c0_41 = arith.constant 0 : index
    %172 = vector.load %arg9[%c0_39, %c0_40, %c0_41] : memref<2x2x32xf32, #tpu.memory_space<vmem>>, vector<1x2x32xf32>
    %173 = vector.shape_cast %172 : vector<1x2x32xf32> to vector<2x32xf32>
    %174 = vector.shape_cast %165 : vector<2x32xf32> to vector<1x2x32xf32>
    tpu.vector_store %arg9[%c0_39, %c0_40, %c0_41], %174 {strides = array<i32>} : memref<2x2x32xf32, #tpu.memory_space<vmem>>, vector<1x2x32xf32>,
    %c1 = arith.constant 1 : index
    %c0_42 = arith.constant 0 : index
    %c0_43 = arith.constant 0 : index
    %175 = vector.load %arg4[%c1, %c0_42, %c0_43] : memref<2x1x128xf32, #tpu.memory_space<vmem>>, vector<1x1x128xf32>
    %176 = vector.shape_cast %175 : vector<1x1x128xf32> to vector<1x128xf32>
    %177 = vector.shape_cast %176 : vector<1x128xf32> to vector<1x128xf32>
    %178 = vector.broadcast %177 : vector<1x128xf32> to vector<16x128xf32>
    %c0_44 = arith.constant 0 : index
    %c0_45 = arith.constant 0 : index
    %179 = vector.load %arg10[%c0_44, %c0_45] : memref<16x32xf32, #tpu.memory_space<vmem>>, vector<16x32xf32>
    %c1_46 = arith.constant 1 : index
    %c0_47 = arith.constant 0 : index
    %c0_48 = arith.constant 0 : index
    %180 = vector.load %arg2[%c1_46, %c0_47, %c0_48] : memref<2x32x128xf32, #tpu.memory_space<vmem>>, vector<1x32x128xf32>
    %181 = vector.shape_cast %180 : vector<1x32x128xf32> to vector<32x128xf32>
    %cst_49 = arith.constant dense<0.000000e+00> : vector<16x128xf32>
    %182 = tpu.matmul %179, %181, %cst_49 {dimension_numbers = #tpu.dot_dimension_numbers<[1], [0], [0], [1], [0, 0, 1, 1], [], []>} : vector<16x32xf32>, vector<32x128xf32>, vector<16x128xf32> -> vector<16x128xf32>
    %183 = arith.addf %182, %178 : vector<16x128xf32>
    %c1_50 = arith.constant 1 : index
    %c0_51 = arith.constant 0 : index
    %c0_52 = arith.constant 0 : index
    %184 = vector.load %arg3[%c1_50, %c0_51, %c0_52] : memref<2x32x128xf32, #tpu.memory_space<vmem>>, vector<1x32x128xf32>
    %185 = vector.shape_cast %184 : vector<1x32x128xf32> to vector<32x128xf32>
    %cst_53 = arith.constant 0.000000e+00 : f32
    %186 = vector.broadcast %cst_53 : f32 to vector<2x32xf32>
    %cst_54 = arith.constant 0.000000e+00 : f32
    %187 = vector.broadcast %cst_54 : f32 to vector<2x32xf32>
    %188 = vector.extract_strided_slice %183 {offsets = [0, 0], sizes = [2, 128], strides = [1, 1]} : vector<16x128xf32> to vector<2x128xf32>
    %cst_55 = arith.constant dense<0.000000e+00> : vector<2x128xf32>
    %189 = tpu.matmul %186, %185, %cst_55 {dimension_numbers = #tpu.dot_dimension_numbers<[1], [0], [0], [1], [0, 0, 1, 1], [], []>} : vector<2x32xf32>, vector<32x128xf32>, vector<2x128xf32> -> vector<2x128xf32>
    %190 = arith.addf %188, %189 : vector<2x128xf32>
    %191 = arith.negf %190 : vector<2x128xf32>
    %192 = math.exp %191 : vector<2x128xf32>
    %cst_56 = arith.constant 1.000000e+00 : f32
    %193 = vector.broadcast %cst_56 : f32 to vector<2x128xf32>
    %194 = arith.addf %193, %192 : vector<2x128xf32>
    %195 = arith.divf %193, %194 : vector<2x128xf32>
    %196 = vector.extract_strided_slice %195 {offsets = [0, 0], sizes = [2, 32], strides = [1, 1]} : vector<2x128xf32> to vector<2x32xf32>
    %197 = vector.extract_strided_slice %195 {offsets = [0, 32], sizes = [2, 32], strides = [1, 1]} : vector<2x128xf32> to vector<2x32xf32>
    %198 = vector.extract_strided_slice %195 {offsets = [0, 96], sizes = [2, 32], strides = [1, 1]} : vector<2x128xf32> to vector<2x32xf32>
    %199 = vector.extract_strided_slice %190 {offsets = [0, 64], sizes = [2, 32], strides = [1, 1]} : vector<2x128xf32> to vector<2x32xf32>
    %200 = math.tanh %199 : vector<2x32xf32>
    %201 = arith.mulf %197, %187 : vector<2x32xf32>
    %202 = arith.mulf %196, %200 : vector<2x32xf32>
    %203 = arith.addf %201, %202 : vector<2x32xf32>
    %204 = math.tanh %203 : vector<2x32xf32>
    %205 = arith.mulf %198, %204 : vector<2x32xf32>
    %c0_57 = arith.constant 0 : index
    %c0_58 = arith.constant 0 : index
    %206 = vector.load %arg10[%c0_57, %c0_58] : memref<16x32xf32, #tpu.memory_space<vmem>>, vector<2x32xf32>
    tpu.vector_store %arg10[%c0_57, %c0_58], %205 {strides = array<i32>} : memref<16x32xf32, #tpu.memory_space<vmem>>, vector<2x32xf32>,
    %207 = vector.extract_strided_slice %183 {offsets = [2, 0], sizes = [2, 128], strides = [1, 1]} : vector<16x128xf32> to vector<2x128xf32>
    %cst_59 = arith.constant dense<0.000000e+00> : vector<2x128xf32>
    %208 = tpu.matmul %205, %185, %cst_59 {dimension_numbers = #tpu.dot_dimension_numbers<[1], [0], [0], [1], [0, 0, 1, 1], [], []>} : vector<2x32xf32>, vector<32x128xf32>, vector<2x128xf32> -> vector<2x128xf32>
    %209 = arith.addf %207, %208 : vector<2x128xf32>
    %210 = arith.negf %209 : vector<2x128xf32>
    %211 = math.exp %210 : vector<2x128xf32>
    %cst_60 = arith.constant 1.000000e+00 : f32
    %212 = vector.broadcast %cst_60 : f32 to vector<2x128xf32>
    %213 = arith.addf %212, %211 : vector<2x128xf32>
    %214 = arith.divf %212, %213 : vector<2x128xf32>
    %215 = vector.extract_strided_slice %214 {offsets = [0, 0], sizes = [2, 32], strides = [1, 1]} : vector<2x128xf32> to vector<2x32xf32>
    %216 = vector.extract_strided_slice %214 {offsets = [0, 32], sizes = [2, 32], strides = [1, 1]} : vector<2x128xf32> to vector<2x32xf32>
    %217 = vector.extract_strided_slice %214 {offsets = [0, 96], sizes = [2, 32], strides = [1, 1]} : vector<2x128xf32> to vector<2x32xf32>
    %218 = vector.extract_strided_slice %209 {offsets = [0, 64], sizes = [2, 32], strides = [1, 1]} : vector<2x128xf32> to vector<2x32xf32>
    %219 = math.tanh %218 : vector<2x32xf32>
    %220 = arith.mulf %216, %203 : vector<2x32xf32>
    %221 = arith.mulf %215, %219 : vector<2x32xf32>
    %222 = arith.addf %220, %221 : vector<2x32xf32>
    %223 = math.tanh %222 : vector<2x32xf32>
    %224 = arith.mulf %217, %223 : vector<2x32xf32>
    %c2_61 = arith.constant 2 : index
    %c0_62 = arith.constant 0 : index
    %225 = vector.load %arg10[%c2_61, %c0_62] : memref<16x32xf32, #tpu.memory_space<vmem>>, vector<2x32xf32>
    tpu.vector_store %arg10[%c2_61, %c0_62], %224 {strides = array<i32>} : memref<16x32xf32, #tpu.memory_space<vmem>>, vector<2x32xf32>,
    %226 = vector.extract_strided_slice %183 {offsets = [4, 0], sizes = [2, 128], strides = [1, 1]} : vector<16x128xf32> to vector<2x128xf32>
    %cst_63 = arith.constant dense<0.000000e+00> : vector<2x128xf32>
    %227 = tpu.matmul %224, %185, %cst_63 {dimension_numbers = #tpu.dot_dimension_numbers<[1], [0], [0], [1], [0, 0, 1, 1], [], []>} : vector<2x32xf32>, vector<32x128xf32>, vector<2x128xf32> -> vector<2x128xf32>
    %228 = arith.addf %226, %227 : vector<2x128xf32>
    %229 = arith.negf %228 : vector<2x128xf32>
    %230 = math.exp %229 : vector<2x128xf32>
    %cst_64 = arith.constant 1.000000e+00 : f32
    %231 = vector.broadcast %cst_64 : f32 to vector<2x128xf32>
    %232 = arith.addf %231, %230 : vector<2x128xf32>
    %233 = arith.divf %231, %232 : vector<2x128xf32>
    %234 = vector.extract_strided_slice %233 {offsets = [0, 0], sizes = [2, 32], strides = [1, 1]} : vector<2x128xf32> to vector<2x32xf32>
    %235 = vector.extract_strided_slice %233 {offsets = [0, 32], sizes = [2, 32], strides = [1, 1]} : vector<2x128xf32> to vector<2x32xf32>
    %236 = vector.extract_strided_slice %233 {offsets = [0, 96], sizes = [2, 32], strides = [1, 1]} : vector<2x128xf32> to vector<2x32xf32>
    %237 = vector.extract_strided_slice %228 {offsets = [0, 64], sizes = [2, 32], strides = [1, 1]} : vector<2x128xf32> to vector<2x32xf32>
    %238 = math.tanh %237 : vector<2x32xf32>
    %239 = arith.mulf %235, %222 : vector<2x32xf32>
    %240 = arith.mulf %234, %238 : vector<2x32xf32>
    %241 = arith.addf %239, %240 : vector<2x32xf32>
    %242 = math.tanh %241 : vector<2x32xf32>
    %243 = arith.mulf %236, %242 : vector<2x32xf32>
    %c4_65 = arith.constant 4 : index
    %c0_66 = arith.constant 0 : index
    %244 = vector.load %arg10[%c4_65, %c0_66] : memref<16x32xf32, #tpu.memory_space<vmem>>, vector<2x32xf32>
    tpu.vector_store %arg10[%c4_65, %c0_66], %243 {strides = array<i32>} : memref<16x32xf32, #tpu.memory_space<vmem>>, vector<2x32xf32>,
    %245 = vector.extract_strided_slice %183 {offsets = [6, 0], sizes = [2, 128], strides = [1, 1]} : vector<16x128xf32> to vector<2x128xf32>
    %cst_67 = arith.constant dense<0.000000e+00> : vector<2x128xf32>
    %246 = tpu.matmul %243, %185, %cst_67 {dimension_numbers = #tpu.dot_dimension_numbers<[1], [0], [0], [1], [0, 0, 1, 1], [], []>} : vector<2x32xf32>, vector<32x128xf32>, vector<2x128xf32> -> vector<2x128xf32>
    %247 = arith.addf %245, %246 : vector<2x128xf32>
    %248 = arith.negf %247 : vector<2x128xf32>
    %249 = math.exp %248 : vector<2x128xf32>
    %cst_68 = arith.constant 1.000000e+00 : f32
    %250 = vector.broadcast %cst_68 : f32 to vector<2x128xf32>
    %251 = arith.addf %250, %249 : vector<2x128xf32>
    %252 = arith.divf %250, %251 : vector<2x128xf32>
    %253 = vector.extract_strided_slice %252 {offsets = [0, 0], sizes = [2, 32], strides = [1, 1]} : vector<2x128xf32> to vector<2x32xf32>
    %254 = vector.extract_strided_slice %252 {offsets = [0, 32], sizes = [2, 32], strides = [1, 1]} : vector<2x128xf32> to vector<2x32xf32>
    %255 = vector.extract_strided_slice %252 {offsets = [0, 96], sizes = [2, 32], strides = [1, 1]} : vector<2x128xf32> to vector<2x32xf32>
    %256 = vector.extract_strided_slice %247 {offsets = [0, 64], sizes = [2, 32], strides = [1, 1]} : vector<2x128xf32> to vector<2x32xf32>
    %257 = math.tanh %256 : vector<2x32xf32>
    %258 = arith.mulf %254, %241 : vector<2x32xf32>
    %259 = arith.mulf %253, %257 : vector<2x32xf32>
    %260 = arith.addf %258, %259 : vector<2x32xf32>
    %261 = math.tanh %260 : vector<2x32xf32>
    %262 = arith.mulf %255, %261 : vector<2x32xf32>
    %c6_69 = arith.constant 6 : index
    %c0_70 = arith.constant 0 : index
    %263 = vector.load %arg10[%c6_69, %c0_70] : memref<16x32xf32, #tpu.memory_space<vmem>>, vector<2x32xf32>
    tpu.vector_store %arg10[%c6_69, %c0_70], %262 {strides = array<i32>} : memref<16x32xf32, #tpu.memory_space<vmem>>, vector<2x32xf32>,
    %264 = vector.extract_strided_slice %183 {offsets = [8, 0], sizes = [2, 128], strides = [1, 1]} : vector<16x128xf32> to vector<2x128xf32>
    %cst_71 = arith.constant dense<0.000000e+00> : vector<2x128xf32>
    %265 = tpu.matmul %262, %185, %cst_71 {dimension_numbers = #tpu.dot_dimension_numbers<[1], [0], [0], [1], [0, 0, 1, 1], [], []>} : vector<2x32xf32>, vector<32x128xf32>, vector<2x128xf32> -> vector<2x128xf32>
    %266 = arith.addf %264, %265 : vector<2x128xf32>
    %267 = arith.negf %266 : vector<2x128xf32>
    %268 = math.exp %267 : vector<2x128xf32>
    %cst_72 = arith.constant 1.000000e+00 : f32
    %269 = vector.broadcast %cst_72 : f32 to vector<2x128xf32>
    %270 = arith.addf %269, %268 : vector<2x128xf32>
    %271 = arith.divf %269, %270 : vector<2x128xf32>
    %272 = vector.extract_strided_slice %271 {offsets = [0, 0], sizes = [2, 32], strides = [1, 1]} : vector<2x128xf32> to vector<2x32xf32>
    %273 = vector.extract_strided_slice %271 {offsets = [0, 32], sizes = [2, 32], strides = [1, 1]} : vector<2x128xf32> to vector<2x32xf32>
    %274 = vector.extract_strided_slice %271 {offsets = [0, 96], sizes = [2, 32], strides = [1, 1]} : vector<2x128xf32> to vector<2x32xf32>
    %275 = vector.extract_strided_slice %266 {offsets = [0, 64], sizes = [2, 32], strides = [1, 1]} : vector<2x128xf32> to vector<2x32xf32>
    %276 = math.tanh %275 : vector<2x32xf32>
    %277 = arith.mulf %273, %260 : vector<2x32xf32>
    %278 = arith.mulf %272, %276 : vector<2x32xf32>
    %279 = arith.addf %277, %278 : vector<2x32xf32>
    %280 = math.tanh %279 : vector<2x32xf32>
    %281 = arith.mulf %274, %280 : vector<2x32xf32>
    %c8_73 = arith.constant 8 : index
    %c0_74 = arith.constant 0 : index
    %282 = vector.load %arg10[%c8_73, %c0_74] : memref<16x32xf32, #tpu.memory_space<vmem>>, vector<2x32xf32>
    tpu.vector_store %arg10[%c8_73, %c0_74], %281 {strides = array<i32>} : memref<16x32xf32, #tpu.memory_space<vmem>>, vector<2x32xf32>,
    %283 = vector.extract_strided_slice %183 {offsets = [10, 0], sizes = [2, 128], strides = [1, 1]} : vector<16x128xf32> to vector<2x128xf32>
    %cst_75 = arith.constant dense<0.000000e+00> : vector<2x128xf32>
    %284 = tpu.matmul %281, %185, %cst_75 {dimension_numbers = #tpu.dot_dimension_numbers<[1], [0], [0], [1], [0, 0, 1, 1], [], []>} : vector<2x32xf32>, vector<32x128xf32>, vector<2x128xf32> -> vector<2x128xf32>
    %285 = arith.addf %283, %284 : vector<2x128xf32>
    %286 = arith.negf %285 : vector<2x128xf32>
    %287 = math.exp %286 : vector<2x128xf32>
    %cst_76 = arith.constant 1.000000e+00 : f32
    %288 = vector.broadcast %cst_76 : f32 to vector<2x128xf32>
    %289 = arith.addf %288, %287 : vector<2x128xf32>
    %290 = arith.divf %288, %289 : vector<2x128xf32>
    %291 = vector.extract_strided_slice %290 {offsets = [0, 0], sizes = [2, 32], strides = [1, 1]} : vector<2x128xf32> to vector<2x32xf32>
    %292 = vector.extract_strided_slice %290 {offsets = [0, 32], sizes = [2, 32], strides = [1, 1]} : vector<2x128xf32> to vector<2x32xf32>
    %293 = vector.extract_strided_slice %290 {offsets = [0, 96], sizes = [2, 32], strides = [1, 1]} : vector<2x128xf32> to vector<2x32xf32>
    %294 = vector.extract_strided_slice %285 {offsets = [0, 64], sizes = [2, 32], strides = [1, 1]} : vector<2x128xf32> to vector<2x32xf32>
    %295 = math.tanh %294 : vector<2x32xf32>
    %296 = arith.mulf %292, %279 : vector<2x32xf32>
    %297 = arith.mulf %291, %295 : vector<2x32xf32>
    %298 = arith.addf %296, %297 : vector<2x32xf32>
    %299 = math.tanh %298 : vector<2x32xf32>
    %300 = arith.mulf %293, %299 : vector<2x32xf32>
    %c10_77 = arith.constant 10 : index
    %c0_78 = arith.constant 0 : index
    %301 = vector.load %arg10[%c10_77, %c0_78] : memref<16x32xf32, #tpu.memory_space<vmem>>, vector<2x32xf32>
    tpu.vector_store %arg10[%c10_77, %c0_78], %300 {strides = array<i32>} : memref<16x32xf32, #tpu.memory_space<vmem>>, vector<2x32xf32>,
    %302 = vector.extract_strided_slice %183 {offsets = [12, 0], sizes = [2, 128], strides = [1, 1]} : vector<16x128xf32> to vector<2x128xf32>
    %cst_79 = arith.constant dense<0.000000e+00> : vector<2x128xf32>
    %303 = tpu.matmul %300, %185, %cst_79 {dimension_numbers = #tpu.dot_dimension_numbers<[1], [0], [0], [1], [0, 0, 1, 1], [], []>} : vector<2x32xf32>, vector<32x128xf32>, vector<2x128xf32> -> vector<2x128xf32>
    %304 = arith.addf %302, %303 : vector<2x128xf32>
    %305 = arith.negf %304 : vector<2x128xf32>
    %306 = math.exp %305 : vector<2x128xf32>
    %cst_80 = arith.constant 1.000000e+00 : f32
    %307 = vector.broadcast %cst_80 : f32 to vector<2x128xf32>
    %308 = arith.addf %307, %306 : vector<2x128xf32>
    %309 = arith.divf %307, %308 : vector<2x128xf32>
    %310 = vector.extract_strided_slice %309 {offsets = [0, 0], sizes = [2, 32], strides = [1, 1]} : vector<2x128xf32> to vector<2x32xf32>
    %311 = vector.extract_strided_slice %309 {offsets = [0, 32], sizes = [2, 32], strides = [1, 1]} : vector<2x128xf32> to vector<2x32xf32>
    %312 = vector.extract_strided_slice %309 {offsets = [0, 96], sizes = [2, 32], strides = [1, 1]} : vector<2x128xf32> to vector<2x32xf32>
    %313 = vector.extract_strided_slice %304 {offsets = [0, 64], sizes = [2, 32], strides = [1, 1]} : vector<2x128xf32> to vector<2x32xf32>
    %314 = math.tanh %313 : vector<2x32xf32>
    %315 = arith.mulf %311, %298 : vector<2x32xf32>
    %316 = arith.mulf %310, %314 : vector<2x32xf32>
    %317 = arith.addf %315, %316 : vector<2x32xf32>
    %318 = math.tanh %317 : vector<2x32xf32>
    %319 = arith.mulf %312, %318 : vector<2x32xf32>
    %c12_81 = arith.constant 12 : index
    %c0_82 = arith.constant 0 : index
    %320 = vector.load %arg10[%c12_81, %c0_82] : memref<16x32xf32, #tpu.memory_space<vmem>>, vector<2x32xf32>
    tpu.vector_store %arg10[%c12_81, %c0_82], %319 {strides = array<i32>} : memref<16x32xf32, #tpu.memory_space<vmem>>, vector<2x32xf32>,
    %321 = vector.extract_strided_slice %183 {offsets = [14, 0], sizes = [2, 128], strides = [1, 1]} : vector<16x128xf32> to vector<2x128xf32>
    %cst_83 = arith.constant dense<0.000000e+00> : vector<2x128xf32>
    %322 = tpu.matmul %319, %185, %cst_83 {dimension_numbers = #tpu.dot_dimension_numbers<[1], [0], [0], [1], [0, 0, 1, 1], [], []>} : vector<2x32xf32>, vector<32x128xf32>, vector<2x128xf32> -> vector<2x128xf32>
    %323 = arith.addf %321, %322 : vector<2x128xf32>
    %324 = arith.negf %323 : vector<2x128xf32>
    %325 = math.exp %324 : vector<2x128xf32>
    %cst_84 = arith.constant 1.000000e+00 : f32
    %326 = vector.broadcast %cst_84 : f32 to vector<2x128xf32>
    %327 = arith.addf %326, %325 : vector<2x128xf32>
    %328 = arith.divf %326, %327 : vector<2x128xf32>
    %329 = vector.extract_strided_slice %328 {offsets = [0, 0], sizes = [2, 32], strides = [1, 1]} : vector<2x128xf32> to vector<2x32xf32>
    %330 = vector.extract_strided_slice %328 {offsets = [0, 32], sizes = [2, 32], strides = [1, 1]} : vector<2x128xf32> to vector<2x32xf32>
    %331 = vector.extract_strided_slice %328 {offsets = [0, 96], sizes = [2, 32], strides = [1, 1]} : vector<2x128xf32> to vector<2x32xf32>
    %332 = vector.extract_strided_slice %323 {offsets = [0, 64], sizes = [2, 32], strides = [1, 1]} : vector<2x128xf32> to vector<2x32xf32>
    %333 = math.tanh %332 : vector<2x32xf32>
    %334 = arith.mulf %330, %317 : vector<2x32xf32>
    %335 = arith.mulf %329, %333 : vector<2x32xf32>
    %336 = arith.addf %334, %335 : vector<2x32xf32>
    %337 = math.tanh %336 : vector<2x32xf32>
    %338 = arith.mulf %331, %337 : vector<2x32xf32>
    %c14_85 = arith.constant 14 : index
    %c0_86 = arith.constant 0 : index
    %339 = vector.load %arg10[%c14_85, %c0_86] : memref<16x32xf32, #tpu.memory_space<vmem>>, vector<2x32xf32>
    tpu.vector_store %arg10[%c14_85, %c0_86], %338 {strides = array<i32>} : memref<16x32xf32, #tpu.memory_space<vmem>>, vector<2x32xf32>,
    %c1_87 = arith.constant 1 : index
    %c0_88 = arith.constant 0 : index
    %c0_89 = arith.constant 0 : index
    %340 = vector.load %arg8[%c1_87, %c0_88, %c0_89] : memref<2x2x32xf32, #tpu.memory_space<vmem>>, vector<1x2x32xf32>
    %341 = vector.shape_cast %340 : vector<1x2x32xf32> to vector<2x32xf32>
    %342 = vector.shape_cast %338 : vector<2x32xf32> to vector<1x2x32xf32>
    tpu.vector_store %arg8[%c1_87, %c0_88, %c0_89], %342 {strides = array<i32>} : memref<2x2x32xf32, #tpu.memory_space<vmem>>, vector<1x2x32xf32>,
    %c1_90 = arith.constant 1 : index
    %c0_91 = arith.constant 0 : index
    %c0_92 = arith.constant 0 : index
    %343 = vector.load %arg9[%c1_90, %c0_91, %c0_92] : memref<2x2x32xf32, #tpu.memory_space<vmem>>, vector<1x2x32xf32>
    %344 = vector.shape_cast %343 : vector<1x2x32xf32> to vector<2x32xf32>
    %345 = vector.shape_cast %336 : vector<2x32xf32> to vector<1x2x32xf32>
    tpu.vector_store %arg9[%c1_90, %c0_91, %c0_92], %345 {strides = array<i32>} : memref<2x2x32xf32, #tpu.memory_space<vmem>>, vector<1x2x32xf32>,
    %c0_93 = arith.constant 0 : index
    %c0_94 = arith.constant 0 : index
    %346 = vector.load %arg10[%c0_93, %c0_94] : memref<16x32xf32, #tpu.memory_space<vmem>>, vector<16x32xf32>
    %c0_95 = arith.constant 0 : index
    %c0_96 = arith.constant 0 : index
    %347 = vector.load %arg5[%c0_95, %c0_96] : memref<32x4xf32, #tpu.memory_space<vmem>>, vector<32x4xf32>
    %cst_97 = arith.constant dense<0.000000e+00> : vector<16x4xf32>
    %348 = tpu.matmul %346, %347, %cst_97 {dimension_numbers = #tpu.dot_dimension_numbers<[1], [0], [0], [1], [0, 0, 1, 1], [], []>} : vector<16x32xf32>, vector<32x4xf32>, vector<16x4xf32> -> vector<16x4xf32>
    %c0_98 = arith.constant 0 : index
    %c0_99 = arith.constant 0 : index
    %349 = vector.load %arg6[%c0_98, %c0_99] : memref<1x4xf32, #tpu.memory_space<vmem>>, vector<1x4xf32>
    %350 = vector.broadcast %349 : vector<1x4xf32> to vector<16x4xf32>
    %351 = arith.addf %348, %350 : vector<16x4xf32>
    %c0_100 = arith.constant 0 : index
    %c0_101 = arith.constant 0 : index
    %352 = vector.load %arg7[%c0_100, %c0_101] : memref<16x4xf32, #tpu.memory_space<vmem>>, vector<16x4xf32>
    tpu.vector_store %arg7[%c0_100, %c0_101], %351 {strides = array<i32>} : memref<16x4xf32, #tpu.memory_space<vmem>>, vector<16x4xf32>,
    return
  }
}

</mosaic_0001>

<bundles_post_ra>
// kernel: tpu_custom_call.1
= control target key start
LH: loop header
LB: loop body
LE: loop exit
PB: predicated region body
PF: predicated region fallthrough
CT: control target
= control target key end

     0   :  { %15 = vsyncpa [#allocation4], 0  ;;  %s3362_s0 = inlined_call_operand.vmem [shape: s32[16,1], index: 0, kind: input, shape index: {}]   ;;  %s3363_s1 = inlined_call_operand.hbm [shape: f32[5,128], index: 1, kind: input, shape index: {}]   ;;  %s3364_s2 = inlined_call_operand.hbm [shape: f32[2,32,128], index: 2, kind: input, shape index: {}]   ;;  %s3365_s3 = inlined_call_operand.vmem [shape: f32[2,32,128], index: 3, kind: input, shape index: {}]   ;;  %s3366_s4 = inlined_call_operand.hbm [shape: f32[2,1,128], index: 4, kind: input, shape index: {}]   ;;  %s3367_s5 = inlined_call_operand.vmem [shape: f32[32,4], index: 5, kind: input, shape index: {}]   ;;  %s3368_s6 = inlined_call_operand.vmem [shape: f32[1,4], index: 6, kind: input, shape index: {}]   ;;  %s3369_s7 = inlined_call_operand.vmem [shape: f32[16,4], index: 7, kind: output, shape index: {0}]   ;;  %s3370_s8 = inlined_call_operand.hbm [shape: f32[2,2,32], index: 8, kind: output, shape index: {1}]   ;;  %s3371_s9 = inlined_call_operand.hbm [shape: f32[2,2,32], index: 9, kind: output, shape index: {2}]  }
   0x1   :  { %16 = vsyncpa [#allocation7], 0 }
   0x2   :  { %17 = vsyncpa [#allocation5], 0 }
   0x3   :  { %18 = vsyncpa [#allocation11], 0  ;;  %s2898_s30 = smov [#allocation6]   ;;  %s2780_s13 = scalar_lea.hbm %s3364_s2, 1024 }
   0x4   :  { %s36_s10 = sshll.u32 %s2898_s30, 4  ;;  %p2781_p0 = scmp.ne.s32.totalorder %s3364_s2, %s2780_s13  ;;  %s37_s10 = int_to_ptr.vmem [resolvable:$true] %s36_s10 }
   0x5   :  { %p2784_p1 = scmp.lt.u32.totalorder %s2780_s13, %s3364_s2 }
   0x7   :  { %p2786_p2 = pnand %p2784_p1, %p2781_p0 }
   0x9   :  { %2789 = shalt.err (!%p2786_p2)
}
   0xa   :  { %s2790_s18 = scalar_lea.vmem %s37_s10, 1024  ;;  %p2795_p4 = scmp.lt.s32.totalorder %s37_s10, %s37_s10 }
   0xb   :  { %p2791_p3 = scmp.ne.s32.totalorder %s37_s10, %s2790_s18  ;;  %p2796_p5 = scmp.lt.s32.totalorder %s2790_s18, %s2790_s18 }
   0xd   :  { %p2797_p6 = por %p2796_p5, %p2795_p4 }
   0xf   :  { %p2798_p7 = pnand %p2797_p6, %p2791_p3 }
  0x11   :  { %2801 = shalt.err (!%p2798_p7)
}
  0x12   :  { %s2899_s19 = smov 128   ;;  %s2900_s20 = smov 8  }
  0x13   :  { %42 = dma.hbm_to_vmem [thread:$0]  %s3364_s2, 1024, %s37_s10, [#allocation7], %s2899_s19, %s2899_s19, %s2900_s20  }
  0x14   :  { %s2901_s23 = smov [#allocation3]   ;;  %s2902_s25 = smov [#allocation8]  }
  0x15   :  { %s27_s24 = sshll.u32 %s2901_s23, 4  ;;  %s50_s26 = sshll.u32 %s2902_s25, 4  ;;  %s28_s24 = int_to_ptr.vmem [resolvable:$true] %s27_s24  ;;  %s51_s26 = int_to_ptr.vmem [resolvable:$true] %s50_s26 }
  0x16   :  { %s2802_s29 = scalar_lea.hbm %s3363_s1, 128 }
  0x17   :  { %p2803_p8 = scmp.ne.s32.totalorder %s3363_s1, %s2802_s29  ;;  %p2806_p9 = scmp.lt.u32.totalorder %s2802_s29, %s3363_s1 }
  0x19   :  { %p2808_p10 = pnand %p2806_p9, %p2803_p8 }
  0x1b   :  { %2811 = shalt.err (!%p2808_p10)
}
  0x1c   :  { %s2812_s2 = scalar_lea.vmem %s28_s24, 128  ;;  %p2817_p12 = scmp.lt.s32.totalorder %s28_s24, %s28_s24 }
  0x1d   :  { %p2813_p11 = scmp.ne.s32.totalorder %s28_s24, %s2812_s2  ;;  %p2818_p13 = scmp.lt.s32.totalorder %s2812_s2, %s2812_s2 }
  0x1f   :  { %p2819_p0 = por %p2818_p13, %p2817_p12 }
  0x21   :  { %p2820_p1 = pnand %p2819_p0, %p2813_p11 }
  0x23   :  { %2823 = shalt.err (!%p2820_p1)
}
  0x24   :  { %30 = dma.hbm_to_vmem [thread:$0]  %s3363_s1, 128, %s28_s24, [#allocation4]  }
  0x25   :  { %s2824_s17 = scalar_lea.hbm %s3366_s4, 32 }
  0x26   :  { %p2825_p2 = scmp.ne.s32.totalorder %s3366_s4, %s2824_s17  ;;  %p2828_p3 = scmp.lt.u32.totalorder %s2824_s17, %s3366_s4 }
  0x28   :  { %p2830_p4 = pnand %p2828_p3, %p2825_p2 }
  0x2a   :  { %2833 = shalt.err (!%p2830_p4)
}
  0x2b   :  { %s2834_s22 = scalar_lea.vmem %s51_s26, 32  ;;  %p2839_p6 = scmp.lt.s32.totalorder %s51_s26, %s51_s26 }
  0x2c   :  { %p2835_p5 = scmp.ne.s32.totalorder %s51_s26, %s2834_s22  ;;  %p2840_p7 = scmp.lt.s32.totalorder %s2834_s22, %s2834_s22 }
  0x2e   :  { %p2841_p8 = por %p2840_p7, %p2839_p6 }
  0x30   :  { %p2842_p9 = pnand %p2841_p8, %p2835_p5 }
  0x32   :  { %2845 = shalt.err (!%p2842_p9)
}
  0x33   :  { %s2903_s1 = smov 16   ;;  %s2904_s23 = smov 1  }
  0x34   :  { %56 = dma.hbm_to_vmem [thread:$0]  %s3366_s4, 32, %s51_s26, [#allocation7], %s2903_s1, %s2903_s1, %s2904_s23  }
  0x35   :  { %2890 = dma.done.wait [#allocation4], 128  }
  0x36   :  { %2891 = vsyncadd [#allocation4], 4294967168 }
  0x37   :  { %2892 = dma.done.wait [#allocation7], 1056  }
  0x38   :  { %2893 = vsyncadd [#allocation7], 4294966240  ;;  %v2905_v0 = vmov 0   ;;  %v72_v1 = vld [vmem:[%s3362_s0] sm:$0xff]  ;;  %v2906_v3 = vmov 0.0|0.0   ;;  %v181_v4 = vld [vmem:[%s3365_s3 + $0x8] sm:$0xff]  ;;  %v70_v12 = vlaneseq }
  0x39   :  { %2651 = vset.pattern.permute.xlu0 %v2905_v0  ;;  %v180_v2 = vld [vmem:[%s3365_s3] sm:$0xff]  ;;  %2522 = vmatprep.subr.bf16.mxu1 %v2906_v3  ;;  %v73_v5 = vld [vmem:[%s3362_s0 + $0x8] sm:$0xff]  ;;  %v182_v7 = vld [vmem:[%s3365_s3 + $0x10] sm:$0xff]  ;;  %vm101_vm0 = vcmask 1044480   ;;  %vm2907_vm1 = vmmov 0   ;;  %v2908_v11 = vmov 0.0  }
  0x3a   :  { %75 = vperm.xlu0 %2651, %v72_v1   ;;  %v3014_v6 = vpack.c.bf16 %v181_v4, %v180_v2  ;;  %v183_v8 = vld [vmem:[%s3365_s3 + $0x18] sm:$0xff]  ;;  %2332 = vmatprep.mubr.msk.f32.mxu1 %vm2907_vm1, %v2908_v11  ;;  %v71_v13 = vand.u32 127, %v70_v12  ;;  %vm94_vm2 = vcmask 39936   ;;  %v2180_v20 = vld [vmem:[#allocation8] ss:$0 sm:$0xff]  ;;  %s2909_s0 = smov 64  }
  0x3b   :  { %v93_v9 = vld [vmem:[#allocation3] sm:$0x1f]  ;;  %v3023_v10 = vpack.c.bf16 %v183_v8, %v182_v7  ;;  %s2910_s15 = smov 32   ;;  %vm287_vm5 = vcmask 254976   ;;  %vm184_vm6 = vcmask 261120   ;;  %vm396_vm7 = vcmask 257026  }
  0x3c   :  { %2524 = vmatpush3.bf16.msra.mxu1 %v3014_v6  ;;  %2319 = vmatprep.subr.msk.mxu0 %vm101_vm0, %v93_v9  ;;  %vm620_vm8 = vcmask 261126   ;;  %vm508_vm9 = vcmask 259076   ;;  %s2913_s26 = smov [#allocation10]  }
  0x3d   :  { %2525 = vmatprep.subr.bf16.mxu1 %v2906_v3  ;;  %2320 = vmatpush3.msk.msra.mxu0 %vm101_vm0, %v93_v9  ;;  %s2159_s12 = sshll.u32 %s2913_s26, 4  ;;  %s2160_s12 = int_to_ptr.vmem [resolvable:$true] %s2159_s12 }
  0x3e   :  { %78 = vperm.xlu0 %2651, %v73_v5   ;;  %2528 = vmatprep.subr.bf16.mxu0 %v2906_v3 }
  0x40   :  { %2527 = vmatpush3.bf16.msra.mxu1 %v3023_v10 }
  0x41   :  { %2534 = vmatprep.subr.bf16.mxu1 %v2906_v3 }
  0x43   :  { %2333 = vmatmul.mubr.f32.vlgmr.msra.gmra.mrb[0].mxu1 %v2908_v11 }
  0x44   :  { %2536 = vmatpush3.bf16.msra.mxu1 %v3014_v6  ;;  %2354 = vmatprep.mubr.msk.f32.mxu1 %vm2907_vm1, %v2908_v11 }
  0x45   :  { %2537 = vmatprep.subr.bf16.mxu1 %v2906_v3 }
  0x48   :  { %2539 = vmatpush3.bf16.msra.mxu1 %v3023_v10 }
  0x49   :  { %2546 = vmatprep.subr.bf16.mxu1 %v2906_v3 }
  0xb9   :  { %v76_v14 = vpop.permute.xlu0 %75 }
  0xba   :  { %vm80_vm3 = vcmp.eq.s32.totalorder %v76_v14, %v71_v13 }
  0xbb   :  { %v2178_v15 = vsel %vm80_vm3, 1.0, %v2908_v11 }
  0xbc   :  { %2321 = vmatprep.mubr.msk.f32.mxu0 %vm94_vm2, %v2178_v15 }
  0xbd   :  { %v79_v16 = vpop.permute.xlu0 %78 }
  0xbe   :  { %vm81_vm4 = vcmp.eq.s32.totalorder %v79_v16, %v71_v13 }
  0xbf   :  { %v2179_v17 = vsel %vm81_vm4, 1.0, %v2908_v11 }
  0xc0   :  { %2322 = vmatmul.mubr.msk.f32.vlgmr.msra.gmra.mrb[0].mxu0 %vm94_vm2, %v2179_v17 }
  0xc1   :  { %2530 = vmatpush3.bf16.msra.mxu0 %v3014_v6  ;;  %2343 = vmatprep.mubr.msk.f32.mxu0 %vm2907_vm1, %v2908_v11 }
  0xc2   :  { %2531 = vmatprep.subr.bf16.mxu0 %v2906_v3 }
  0xc5   :  { %2533 = vmatpush3.bf16.msra.mxu0 %v3023_v10 }
  0xc6   :  { %2540 = vmatprep.subr.bf16.mxu0 %v2906_v3 }
 0x116   :  { %v254_v18 = vpop.f32.mrb[0].mxu1 }
 0x117   :  { %v2334_v19 = vpop.f32.mrb[1].mxu1 }
 0x193   :  { %v2323_v21 = vpop.f32.mrb[0].mxu0 }
 0x194   :  { %v3046_v22 = vadd.f32 %v2323_v21, %v2180_v20  ;;  %v171_v23 = vpop.f32.mrb[1].mxu0 }
 0x195   :  { %v3048_v24 = vadd.f32 %v2180_v20, %v171_v23 }
 0x197   :  { %v258_v25 = vadd.f32 %v254_v18, %v3048_v24 }
 0x199   :  { %2652 = vtanh.f32 %v258_v25  ;;  %v2184_v27 = vmul.f32 -1.442695, %v258_v25 }
 0x19b   :  { %2654 = vpow2.f32 %v2184_v27 }
 0x1a3   :  { %v2653_v26 = vpop.eup %2652 }
 0x1a4   :  { %268 = vrot.lane.b32.xlu1 %v2653_v26, %s2909_s0 }
 0x1a5   :  { %v2655_v28 = vpop.eup %2654 }
 0x1a6   :  { %v262_v29 = vadd.f32 1.0, %v2655_v28 }
 0x1a8   :  { %2656 = vrcp.f32 %v262_v29 }
 0x1b2   :  { %v2657_v30 = vpop.eup %2656 }
 0x1b3   :  { %v266_v33 = vmul.f32 0.0, %v2657_v30 }
 0x216   :  { %v269_v31 = vpop.permute.xlu1 %268 }
 0x217   :  { %v271_v32 = vmul.f32 %v2657_v30, %v269_v31 }
 0x219   :  { %273 = vrot.lane.b32.xlu1 %v271_v32, %s2910_s15 }
 0x28b   :  { %v274_v34 = vpop.permute.xlu1 %273 }
 0x28c   :  { %v276_v35 = vadd.f32 %v274_v34, %v266_v33 }
 0x28e   :  { %2658 = vtanh.f32 %v276_v35  ;;  %v373_v51 = vrot.slane %v276_v35, 6 }
 0x298   :  { %v2659_v36 = vpop.eup %2658 }
 0x299   :  { %279 = vrot.lane.b32.xlu0 %v2659_v36, %s2909_s0 }
 0x30b   :  { %v280_v37 = vpop.permute.xlu0 %279 }
 0x30c   :  { %v282_v38 = vmul.f32 %v2657_v30, %v280_v37 }
 0x30e   :  { %284 = vrot.lane.b32.xlu1 %v282_v38, %s2910_s15 }
 0x380   :  { %v285_v39 = vpop.permute.xlu1 %284 }
 0x381   :  { %288 = vst.msk [vmem:[#allocation2] sm:$0x3] %vm287_vm5, %v285_v39  ;;  %2344 = vmatmul.mubr.msk.f32.vlgmr.msra.gmra.mrb[2].mxu0 %vm184_vm6, %v285_v39 }
 0x382   :  { %2542 = vmatpush3.bf16.msra.mxu0 %v3014_v6  ;;  %2365 = vmatprep.mubr.msk.f32.mxu0 %vm2907_vm1, %v2908_v11 }
 0x383   :  { %2543 = vmatprep.subr.bf16.mxu0 %v2906_v3 }
 0x386   :  { %2545 = vmatpush3.bf16.msra.mxu0 %v3023_v10 }
 0x387   :  { %2552 = vmatprep.subr.bf16.mxu0 %v2906_v3 }
 0x454   :  { %v357_v40 = vpop.f32.mrb[2].mxu0 }
 0x455   :  { %v362_v41 = vrot.slane %v357_v40, 6  ;;  %v2345_v42 = vpop.f32.mrb[3].mxu0 }
 0x457   :  { %v364_v43 = vadd.f32 %v362_v41, %v3048_v24 }
 0x459   :  { %2660 = vtanh.f32 %v364_v43  ;;  %v2186_v45 = vmul.f32 -1.442695, %v364_v43 }
 0x45b   :  { %2662 = vpow2.f32 %v2186_v45 }
 0x463   :  { %v2661_v44 = vpop.eup %2660 }
 0x464   :  { %377 = vrot.lane.b32.xlu0 %v2661_v44, %s2909_s0 }
 0x465   :  { %v2663_v46 = vpop.eup %2662 }
 0x466   :  { %v368_v47 = vadd.f32 1.0, %v2663_v46 }
 0x468   :  { %2664 = vrcp.f32 %v368_v47 }
 0x472   :  { %v2665_v48 = vpop.eup %2664 }
 0x473   :  { %v375_v52 = vmul.f32 %v2665_v48, %v373_v51 }
 0x4d6   :  { %v378_v49 = vpop.permute.xlu0 %377 }
 0x4d7   :  { %v380_v50 = vmul.f32 %v2665_v48, %v378_v49 }
 0x4d9   :  { %382 = vrot.lane.b32.xlu1 %v380_v50, %s2910_s15 }
 0x54b   :  { %v383_v53 = vpop.permute.xlu1 %382 }
 0x54c   :  { %v385_v54 = vadd.f32 %v383_v53, %v375_v52 }
 0x54e   :  { %2666 = vtanh.f32 %v385_v54  ;;  %v485_v9 = vrot.slane %v385_v54, 6 }
 0x558   :  { %v2667_v55 = vpop.eup %2666 }
 0x559   :  { %388 = vrot.lane.b32.xlu0 %v2667_v55, %s2909_s0 }
 0x5cb   :  { %v389_v56 = vpop.permute.xlu0 %388 }
 0x5cc   :  { %v3067_v57 = vmul.f32 %v2665_v48, %v389_v56 }
 0x5ce   :  { %v398_v58 = vrot.slane %v3067_v57, 2 }
 0x5d0   :  { %399 = vrot.lane.b32.xlu1 %v398_v58, %s2910_s15 }
 0x642   :  { %v400_v59 = vpop.permute.xlu1 %399 }
 0x643   :  { %2355 = vmatmul.mubr.msk.f32.vlgmr.msra.gmra.mrb[2].mxu1 %vm184_vm6, %v400_v59 }
 0x644   :  { %2548 = vmatpush3.bf16.msra.mxu1 %v3014_v6  ;;  %2376 = vmatprep.mubr.msk.f32.mxu1 %vm2907_vm1, %v2908_v11 }
 0x645   :  { %2549 = vmatprep.subr.bf16.mxu1 %v2906_v3 }
 0x648   :  { %2551 = vmatpush3.bf16.msra.mxu1 %v3023_v10 }
 0x649   :  { %2558 = vmatprep.subr.bf16.mxu1 %v2906_v3 }
 0x716   :  { %v469_v60 = vpop.f32.mrb[2].mxu1 }
 0x717   :  { %v474_v61 = vrot.slane %v469_v60, 4  ;;  %v2356_v62 = vpop.f32.mrb[3].mxu1 }
 0x719   :  { %v476_v63 = vadd.f32 %v474_v61, %v3048_v24 }
 0x71b   :  { %2668 = vtanh.f32 %v476_v63  ;;  %v2188_v1 = vmul.f32 -1.442695, %v476_v63 }
 0x71d   :  { %2670 = vpow2.f32 %v2188_v1 }
 0x725   :  { %v2669_v0 = vpop.eup %2668 }
 0x726   :  { %489 = vrot.lane.b32.xlu0 %v2669_v0, %s2909_s0 }
 0x727   :  { %v2671_v2 = vpop.eup %2670 }
 0x728   :  { %v480_v4 = vadd.f32 1.0, %v2671_v2 }
 0x72a   :  { %2672 = vrcp.f32 %v480_v4 }
 0x734   :  { %v2673_v5 = vpop.eup %2672 }
 0x735   :  { %v487_v12 = vmul.f32 %v2673_v5, %v485_v9 }
 0x798   :  { %v490_v7 = vpop.permute.xlu0 %489 }
 0x799   :  { %v492_v8 = vmul.f32 %v2673_v5, %v490_v7 }
 0x79b   :  { %494 = vrot.lane.b32.xlu1 %v492_v8, %s2910_s15 }
 0x80d   :  { %v495_v13 = vpop.permute.xlu1 %494 }
 0x80e   :  { %v497_v14 = vadd.f32 %v495_v13, %v487_v12 }
 0x810   :  { %2674 = vtanh.f32 %v497_v14  ;;  %v597_v33 = vrot.slane %v497_v14, 6 }
 0x81a   :  { %v2675_v15 = vpop.eup %2674 }
 0x81b   :  { %500 = vrot.lane.b32.xlu0 %v2675_v15, %s2909_s0 }
 0x88d   :  { %v501_v16 = vpop.permute.xlu0 %500 }
 0x88e   :  { %v3082_v17 = vmul.f32 %v2673_v5, %v501_v16 }
 0x890   :  { %v510_v18 = vrot.slane %v3082_v17, 4 }
 0x892   :  { %511 = vrot.lane.b32.xlu1 %v510_v18, %s2910_s15 }
 0x904   :  { %v512_v19 = vpop.permute.xlu1 %511 }
 0x905   :  { %2366 = vmatmul.mubr.msk.f32.vlgmr.msra.gmra.mrb[4].mxu0 %vm184_vm6, %v512_v19 }
 0x906   :  { %2554 = vmatpush3.bf16.msra.mxu0 %v3014_v6  ;;  %2387 = vmatprep.mubr.msk.f32.mxu0 %vm2907_vm1, %v2908_v11 }
 0x907   :  { %2555 = vmatprep.subr.bf16.mxu0 %v2906_v3 }
 0x90a   :  { %2557 = vmatpush3.bf16.msra.mxu0 %v3023_v10 }
 0x90b   :  { %2564 = vmatprep.subr.bf16.mxu0 %v2906_v3 }
 0x9d8   :  { %v581_v20 = vpop.f32.mrb[4].mxu0 }
 0x9d9   :  { %v586_v21 = vrot.slane %v581_v20, 2  ;;  %v2367_v23 = vpop.f32.mrb[5].mxu0 }
 0x9db   :  { %v588_v25 = vadd.f32 %v586_v21, %v3048_v24 }
 0x9dd   :  { %2676 = vtanh.f32 %v588_v25  ;;  %v2190_v27 = vmul.f32 -1.442695, %v588_v25 }
 0x9df   :  { %2678 = vpow2.f32 %v2190_v27 }
 0x9e7   :  { %v2677_v26 = vpop.eup %2676 }
 0x9e8   :  { %601 = vrot.lane.b32.xlu0 %v2677_v26, %s2909_s0 }
 0x9e9   :  { %v2679_v28 = vpop.eup %2678 }
 0x9ea   :  { %v592_v29 = vadd.f32 1.0, %v2679_v28 }
 0x9ec   :  { %2680 = vrcp.f32 %v592_v29 }
 0x9f6   :  { %v2681_v30 = vpop.eup %2680 }
 0x9f7   :  { %v599_v34 = vmul.f32 %v2681_v30, %v597_v33 }
 0xa5a   :  { %v602_v31 = vpop.permute.xlu0 %601 }
 0xa5b   :  { %v604_v32 = vmul.f32 %v2681_v30, %v602_v31 }
 0xa5d   :  { %606 = vrot.lane.b32.xlu1 %v604_v32, %s2910_s15 }
 0xacf   :  { %v607_v35 = vpop.permute.xlu1 %606 }
 0xad0   :  { %v609_v36 = vadd.f32 %v607_v35, %v599_v34 }
 0xad2   :  { %2682 = vtanh.f32 %v609_v36  ;;  %v706_v51 = vrot.slane %v609_v36, 6 }
 0xadc   :  { %v2683_v24 = vpop.eup %2682 }
 0xadd   :  { %612 = vrot.lane.b32.xlu0 %v2683_v24, %s2909_s0 }
 0xb4f   :  { %v613_v37 = vpop.permute.xlu0 %612 }
 0xb50   :  { %v3097_v38 = vmul.f32 %v2681_v30, %v613_v37 }
 0xb52   :  { %v622_v39 = vrot.slane %v3097_v38, 6 }
 0xb54   :  { %623 = vrot.lane.b32.xlu1 %v622_v39, %s2910_s15 }
 0xbc6   :  { %v624_v40 = vpop.permute.xlu1 %623 }
 0xbc7   :  { %2377 = vmatmul.mubr.msk.f32.vlgmr.msra.gmra.mrb[4].mxu1 %vm184_vm6, %v624_v40 }
 0xbc8   :  { %2560 = vmatpush3.bf16.msra.mxu1 %v3014_v6  ;;  %2398 = vmatprep.mubr.msk.f32.mxu1 %vm2907_vm1, %v2908_v11 }
 0xbc9   :  { %2561 = vmatprep.subr.bf16.mxu1 %v2906_v3 }
 0xbcc   :  { %2563 = vmatpush3.bf16.msra.mxu1 %v3023_v10 }
 0xc9a   :  { %v693_v41 = vpop.f32.mrb[4].mxu1 }
 0xc9b   :  { %v697_v42 = vadd.f32 %v693_v41, %v3046_v22  ;;  %v2378_v43 = vpop.f32.mrb[5].mxu1 }
 0xc9d   :  { %2684 = vtanh.f32 %v697_v42  ;;  %v2192_v45 = vmul.f32 -1.442695, %v697_v42 }
 0xc9f   :  { %2686 = vpow2.f32 %v2192_v45 }
 0xca7   :  { %v2685_v44 = vpop.eup %2684 }
 0xca8   :  { %710 = vrot.lane.b32.xlu0 %v2685_v44, %s2909_s0 }
 0xca9   :  { %v2687_v46 = vpop.eup %2686 }
 0xcaa   :  { %v701_v47 = vadd.f32 1.0, %v2687_v46 }
 0xcac   :  { %2688 = vrcp.f32 %v701_v47 }
 0xcb6   :  { %v2689_v48 = vpop.eup %2688 }
 0xcb7   :  { %v708_v52 = vmul.f32 %v2689_v48, %v706_v51 }
 0xd1a   :  { %v711_v49 = vpop.permute.xlu0 %710 }
 0xd1b   :  { %v713_v50 = vmul.f32 %v2689_v48, %v711_v49 }
 0xd1d   :  { %715 = vrot.lane.b32.xlu1 %v713_v50, %s2910_s15 }
 0xd8f   :  { %v716_v53 = vpop.permute.xlu1 %715 }
 0xd90   :  { %v718_v54 = vadd.f32 %v716_v53, %v708_v52 }
 0xd92   :  { %2690 = vtanh.f32 %v718_v54 }
 0xd9c   :  { %v2691_v55 = vpop.eup %2690 }
 0xd9d   :  { %721 = vrot.lane.b32.xlu0 %v2691_v55, %s2909_s0 }
 0xe0f   :  { %v722_v56 = vpop.permute.xlu0 %721 }
 0xe10   :  { %v724_v58 = vmul.f32 %v2689_v48, %v722_v56 }
 0xe12   :  { %726 = vrot.lane.b32.xlu1 %v724_v58, %s2910_s15  ;;  %v1077_v58 = vld [vmem:[#allocation6 + $0x20] sm:$0xff] }
 0xe84   :  { %v727_v59 = vpop.permute.xlu1 %726 }
 0xe85   :  { %729 = vst.msk [vmem:[#allocation2 + $0x8] sm:$0x3] %vm287_vm5, %v727_v59  ;;  %2388 = vmatmul.mubr.msk.f32.vlgmr.msra.gmra.mrb[6].mxu0 %vm184_vm6, %v727_v59  ;;  %v1078_v59 = vld [vmem:[#allocation6 + $0x28] sm:$0xff] }
 0xe86   :  { %2566 = vmatpush3.bf16.msra.mxu0 %v3014_v6  ;;  %2409 = vmatprep.mubr.msk.f32.mxu0 %vm2907_vm1, %v2908_v11 }
 0xe87   :  { %2567 = vmatprep.subr.bf16.mxu0 %v2906_v3 }
 0xe8a   :  { %2569 = vmatpush3.bf16.msra.mxu0 %v3023_v10  ;;  %v814_v10 = vrot.slane %v718_v54, 6 }
 0xe8b   :  { %2578 = vmatprep.subr.bf16.mxu0 %v2906_v3 }
 0xf58   :  { %v798_v60 = vpop.f32.mrb[6].mxu0 }
 0xf59   :  { %v803_v61 = vrot.slane %v798_v60, 6  ;;  %v2389_v62 = vpop.f32.mrb[7].mxu0  ;;  %v2570_v60 = vpack.c.bf16 %v1078_v59, %v1077_v58 }
 0xf5a   :  { %v2203_v62 = vld [vmem:[%s3365_s3 + $0x28] sm:$0xff] }
 0xf5b   :  { %v805_v63 = vadd.f32 %v803_v61, %v3046_v22  ;;  %2571 = vmatprep.subr.bf16.mxu1 %v2570_v60  ;;  %v2202_v61 = vld [vmem:[%s3365_s3 + $0x20] sm:$0xff] }
 0xf5d   :  { %2692 = vtanh.f32 %v805_v63  ;;  %v2194_v1 = vmul.f32 -1.442695, %v805_v63  ;;  %v1079_v63 = vld [vmem:[#allocation6 + $0x30] sm:$0xff] }
 0xf5f   :  { %2694 = vpow2.f32 %v2194_v1  ;;  %v2204_v1 = vld [vmem:[%s3365_s3 + $0x30] sm:$0xff] }
 0xf67   :  { %v2693_v0 = vpop.eup %2692 }
 0xf68   :  { %818 = vrot.lane.b32.xlu0 %v2693_v0, %s2909_s0  ;;  %v3162_v0 = vpack.c.bf16 %v2203_v62, %v2202_v61 }
 0xf69   :  { %v2695_v6 = vpop.eup %2694 }
 0xf6a   :  { %v809_v2 = vadd.f32 1.0, %v2695_v6  ;;  %v2205_v6 = vld [vmem:[%s3365_s3 + $0x38] sm:$0xff]  ;;  %s2911_s3 = smov 96  }
 0xf6c   :  { %2696 = vrcp.f32 %v809_v2 }
 0xf76   :  { %v2697_v4 = vpop.eup %2696 }
 0xf77   :  { %v816_v8 = vmul.f32 %v2697_v4, %v814_v10 }
 0xfda   :  { %v819_v5 = vpop.permute.xlu0 %818 }
 0xfdb   :  { %v821_v7 = vmul.f32 %v2697_v4, %v819_v5 }
 0xfdd   :  { %823 = vrot.lane.b32.xlu1 %v821_v7, %s2910_s15 }
0x104f   :  { %v824_v9 = vpop.permute.xlu1 %823 }
0x1050   :  { %v826_v12 = vadd.f32 %v824_v9, %v816_v8 }
0x1052   :  { %2698 = vtanh.f32 %v826_v12  ;;  %v925_v32 = vrot.slane %v826_v12, 6 }
0x105c   :  { %v2699_v13 = vpop.eup %2698 }
0x105d   :  { %829 = vrot.lane.b32.xlu0 %v2699_v13, %s2909_s0 }
0x10cf   :  { %v830_v14 = vpop.permute.xlu0 %829 }
0x10d0   :  { %v3124_v15 = vmul.f32 %v2697_v4, %v830_v14  ;;  %v3171_v4 = vpack.c.bf16 %v2205_v6, %v2204_v1 }
0x10d2   :  { %v838_v16 = vrot.slane %v3124_v15, 2 }
0x10d4   :  { %839 = vrot.lane.b32.xlu1 %v838_v16, %s2910_s15  ;;  %v2199_v16 = vld [vmem:[#allocation8 + $0x1] ss:$0 sm:$0xff] }
0x1146   :  { %v840_v18 = vpop.permute.xlu1 %839 }
0x1147   :  { %2399 = vmatmul.mubr.msk.f32.vlgmr.msra.gmra.mrb[6].mxu1 %vm184_vm6, %v840_v18 }
0x1148   :  { %2573 = vmatpush3.bf16.msra.mxu1 %v2570_v60 }
0x121a   :  { %v909_v19 = vpop.f32.mrb[6].mxu1 }
0x121b   :  { %v914_v20 = vrot.slane %v909_v19, 4  ;;  %v2400_v21 = vpop.f32.mrb[7].mxu1 }
0x121d   :  { %v916_v23 = vadd.f32 %v914_v20, %v3046_v22 }
0x121f   :  { %2700 = vtanh.f32 %v916_v23  ;;  %v2196_v26 = vmul.f32 -1.442695, %v916_v23 }
0x1221   :  { %2702 = vpow2.f32 %v2196_v26 }
0x1229   :  { %v2701_v25 = vpop.eup %2700 }
0x122a   :  { %929 = vrot.lane.b32.xlu0 %v2701_v25, %s2909_s0 }
0x122b   :  { %v2703_v27 = vpop.eup %2702 }
0x122c   :  { %v920_v28 = vadd.f32 1.0, %v2703_v27 }
0x122e   :  { %2704 = vrcp.f32 %v920_v28 }
0x1238   :  { %v2705_v29 = vpop.eup %2704 }
0x1239   :  { %v927_v33 = vmul.f32 %v2705_v29, %v925_v32 }
0x129c   :  { %v930_v30 = vpop.permute.xlu0 %929 }
0x129d   :  { %v932_v31 = vmul.f32 %v2705_v29, %v930_v30 }
0x129f   :  { %934 = vrot.lane.b32.xlu1 %v932_v31, %s2910_s15 }
0x1311   :  { %v935_v34 = vpop.permute.xlu1 %934 }
0x1312   :  { %v937_v35 = vadd.f32 %v935_v34, %v927_v33 }
0x1314   :  { %2706 = vtanh.f32 %v937_v35 }
0x131e   :  { %v2707_v36 = vpop.eup %2706 }
0x131f   :  { %940 = vrot.lane.b32.xlu0 %v2707_v36, %s2909_s0 }
0x1391   :  { %v941_v24 = vpop.permute.xlu0 %940 }
0x1392   :  { %v943_v37 = vmul.f32 %v2705_v29, %v941_v24 }
0x1394   :  { %v949_v39 = vrot.slane %v943_v37, 4 }
0x1396   :  { %950 = vrot.lane.b32.xlu1 %v949_v39, %s2910_s15 }
0x1408   :  { %v951_v40 = vpop.permute.xlu1 %950 }
0x1409   :  { %2410 = vmatmul.mubr.msk.f32.vlgmr.msra.gmra.mrb[8].mxu0 %vm184_vm6, %v951_v40 }
0x140a   :  { %2431 = vmatprep.mubr.msk.f32.mxu0 %vm2907_vm1, %v2908_v11  ;;  %2580 = vmatpush3.bf16.msra.mxu0 %v3162_v0 }
0x140b   :  { %2581 = vmatprep.subr.bf16.mxu0 %v2906_v3 }
0x140e   :  { %2583 = vmatpush3.bf16.msra.mxu0 %v3171_v4 }
0x140f   :  { %2590 = vmatprep.subr.bf16.mxu0 %v2906_v3 }
0x1411   :  { %2432 = vmatmul.mubr.f32.vlgmr.msra.gmra.mrb[10].mxu0 %v2908_v11 }
0x1412   :  { %2592 = vmatpush3.bf16.msra.mxu0 %v3162_v0  ;;  %2453 = vmatprep.mubr.msk.f32.mxu0 %vm2907_vm1, %v2908_v11 }
0x1413   :  { %2593 = vmatprep.subr.bf16.mxu0 %v2906_v3 }
0x1416   :  { %2595 = vmatpush3.bf16.msra.mxu0 %v3171_v4 }
0x1417   :  { %2602 = vmatprep.subr.bf16.mxu0 %v2906_v3 }
0x14dc   :  { %v1020_v41 = vpop.f32.mrb[8].mxu0 }
0x14dd   :  { %v1025_v42 = vrot.slane %v1020_v41, 2  ;;  %v2411_v43 = vpop.f32.mrb[9].mxu0 }
0x14df   :  { %v1027_v44 = vadd.f32 %v1025_v42, %v3046_v22  ;;  %v1036_v22 = vrot.slane %v937_v35, 6 }
0x14e1   :  { %2708 = vtanh.f32 %v1027_v44  ;;  %v2198_v46 = vmul.f32 -1.442695, %v1027_v44 }
0x14e3   :  { %2710 = vpow2.f32 %v2198_v46 }
0x14e4   :  { %v1233_v14 = vpop.f32.mrb[10].mxu0 }
0x14eb   :  { %v2709_v45 = vpop.eup %2708 }
0x14ec   :  { %1040 = vrot.lane.b32.xlu0 %v2709_v45, %s2909_s0 }
0x14ed   :  { %v2711_v47 = vpop.eup %2710 }
0x14ee   :  { %v1031_v48 = vadd.f32 1.0, %v2711_v47 }
0x14f0   :  { %2712 = vrcp.f32 %v1031_v48 }
0x14fa   :  { %v2713_v49 = vpop.eup %2712 }
0x14fb   :  { %v1038_v52 = vmul.f32 %v2713_v49, %v1036_v22 }
0x155e   :  { %v1041_v50 = vpop.permute.xlu0 %1040 }
0x155f   :  { %v1043_v51 = vmul.f32 %v2713_v49, %v1041_v50 }
0x1561   :  { %1045 = vrot.lane.b32.xlu1 %v1043_v51, %s2910_s15 }
0x1565   :  { %393 = vrot.lane.b32.xlu1 %v3067_v57, %s2910_s15 }
0x1569   :  { %617 = vrot.lane.b32.xlu1 %v3097_v38, %s2910_s15 }
0x156d   :  { %945 = vrot.lane.b32.xlu1 %v943_v37, %s2910_s15 }
0x15d3   :  { %v1046_v53 = vpop.permute.xlu1 %1045 }
0x15d4   :  { %v3145_v54 = vadd.f32 %v1046_v53, %v1038_v52 }
0x15d6   :  { %2714 = vtanh.f32 %v3145_v54 }
0x15d7   :  { %v394_v55 = vpop.permute.xlu1 %393 }
0x15d8   :  { %397 = vst.msk [vmem:[#allocation2] sm:$0xc] %vm396_vm7, %v394_v55 }
0x15db   :  { %v618_v56 = vpop.permute.xlu1 %617 }
0x15dc   :  { %621 = vst.msk [vmem:[#allocation2] sm:$0xc0] %vm620_vm8, %v618_v56 }
0x15df   :  { %v946_v57 = vpop.permute.xlu1 %945 }
0x15e0   :  { %v2715_v38 = vpop.eup %2714  ;;  %948 = vst.msk [vmem:[#allocation2 + $0x8] sm:$0x30] %vm508_vm9, %v946_v57 }
0x15e1   :  { %1051 = vrot.lane.b32.xlu0 %v2715_v38, %s2909_s0 }
0x15e5   :  { %505 = vrot.lane.b32.xlu0 %v3082_v17, %s2910_s15  ;;  %v1080_v17 = vld [vmem:[#allocation6 + $0x38] sm:$0xff] }
0x15e6   :  { %v2574_v2 = vpack.c.bf16 %v1080_v17, %v1079_v63 }
0x15e8   :  { %2575 = vmatprep.subr.bf16.mxu1 %v2574_v2 }
0x15e9   :  { %834 = vrot.lane.b32.xlu0 %v3124_v15, %s2910_s15  ;;  %2577 = vmatpush3.bf16.msra.mxu1 %v2574_v2  ;;  %v2433_v15 = vpop.f32.mrb[11].mxu0 }
0x15ea   :  { %2584 = vmatprep.subr.bf16.mxu1 %v2906_v3 }
0x1653   :  { %v1052_v5 = vpop.permute.xlu0 %1051 }
0x1654   :  { %v1054_v7 = vmul.f32 %v2713_v49, %v1052_v5 }
0x1656   :  { %1056 = vrot.lane.b32.xlu0 %v1054_v7, %s2910_s15 }
0x1657   :  { %v506_v10 = vpop.permute.xlu0 %505 }
0x1658   :  { %509 = vst.msk [vmem:[#allocation2] sm:$0x30] %vm508_vm9, %v506_v10 }
0x165b   :  { %v835_v8 = vpop.permute.xlu0 %834 }
0x165c   :  { %837 = vst.msk [vmem:[#allocation2 + $0x8] sm:$0xc] %vm396_vm7, %v835_v8 }
0x165f   :  { %v1074_v9 = vld [vmem:[#allocation2] sm:$0xff] }
0x1660   :  { %2420 = vmatprep.mubr.msk.f32.mxu1 %vm184_vm6, %v1074_v9 }
0x16c8   :  { %v1057_v12 = vpop.permute.xlu0 %1056 }
0x16c9   :  { %1059 = vst.msk [vmem:[#allocation2 + $0x8] sm:$0xc0] %vm620_vm8, %v1057_v12  ;;  %1060 = vst.msk [vmem:[#allocation9 - $0x6] sm:$0xc0] %vm620_vm8, %v1057_v12 }
0x16d0   :  { %v1075_v13 = vld [vmem:[#allocation2 + $0x8] sm:$0xff] }
0x16d1   :  { %2421 = vmatmul.mubr.msk.f32.vlgmr.msra.gmra.mrb[8].mxu1 %vm184_vm6, %v1075_v13 }
0x16d2   :  { %2586 = vmatpush3.bf16.msra.mxu1 %v3162_v0  ;;  %2442 = vmatprep.mubr.msk.f32.mxu1 %vm2907_vm1, %v2908_v11 }
0x16d3   :  { %2587 = vmatprep.subr.bf16.mxu1 %v2906_v3 }
0x16d6   :  { %2589 = vmatpush3.bf16.msra.mxu1 %v3171_v4 }
0x16d7   :  { %2596 = vmatprep.subr.bf16.mxu1 %v2906_v3 }
0x17a4   :  { %v2422_v18 = vpop.f32.mrb[8].mxu1 }
0x17a5   :  { %v3197_v19 = vadd.f32 %v2422_v18, %v2199_v16  ;;  %v1153_v20 = vpop.f32.mrb[9].mxu1 }
0x17a6   :  { %v3199_v21 = vadd.f32 %v2199_v16, %v1153_v20 }
0x17a8   :  { %v1237_v23 = vadd.f32 %v1233_v14, %v3199_v21 }
0x17aa   :  { %2716 = vtanh.f32 %v1237_v23  ;;  %v2206_v26 = vmul.f32 -1.442695, %v1237_v23 }
0x17ac   :  { %2718 = vpow2.f32 %v2206_v26 }
0x17b4   :  { %v2717_v25 = vpop.eup %2716 }
0x17b5   :  { %1247 = vrot.lane.b32.xlu1 %v2717_v25, %s2909_s0 }
0x17b6   :  { %v2719_v27 = vpop.eup %2718 }
0x17b7   :  { %v1241_v28 = vadd.f32 1.0, %v2719_v27 }
0x17b9   :  { %2720 = vrcp.f32 %v1241_v28 }
0x17c3   :  { %v2721_v29 = vpop.eup %2720 }
0x17c4   :  { %v1245_v32 = vmul.f32 0.0, %v2721_v29 }
0x1827   :  { %v1248_v30 = vpop.permute.xlu1 %1247 }
0x1828   :  { %v1250_v31 = vmul.f32 %v2721_v29, %v1248_v30 }
0x182a   :  { %1252 = vrot.lane.b32.xlu0 %v1250_v31, %s2910_s15 }
0x189c   :  { %v1253_v33 = vpop.permute.xlu0 %1252 }
0x189d   :  { %v1255_v34 = vadd.f32 %v1253_v33, %v1245_v32 }
0x189f   :  { %2722 = vtanh.f32 %v1255_v34  ;;  %v1351_v50 = vrot.slane %v1255_v34, 6 }
0x18a9   :  { %v2723_v35 = vpop.eup %2722 }
0x18aa   :  { %1258 = vrot.lane.b32.xlu1 %v2723_v35, %s2909_s0 }
0x191c   :  { %v1259_v36 = vpop.permute.xlu1 %1258 }
0x191d   :  { %v1261_v24 = vmul.f32 %v2721_v29, %v1259_v36 }
0x191f   :  { %1263 = vrot.lane.b32.xlu0 %v1261_v24, %s2910_s15 }
0x1991   :  { %v1264_v37 = vpop.permute.xlu0 %1263 }
0x1992   :  { %1266 = vst.msk [vmem:[#allocation2] sm:$0x3] %vm287_vm5, %v1264_v37  ;;  %2443 = vmatmul.mubr.msk.f32.vlgmr.msra.gmra.mrb[10].mxu1 %vm184_vm6, %v1264_v37 }
0x1993   :  { %2598 = vmatpush3.bf16.msra.mxu1 %v3162_v0  ;;  %2464 = vmatprep.mubr.msk.f32.mxu1 %vm2907_vm1, %v2908_v11 }
0x1994   :  { %2599 = vmatprep.subr.bf16.mxu1 %v2906_v3 }
0x1997   :  { %2601 = vmatpush3.bf16.msra.mxu1 %v3171_v4 }
0x1998   :  { %2608 = vmatprep.subr.bf16.mxu1 %v2906_v3 }
0x1a65   :  { %v1335_v39 = vpop.f32.mrb[10].mxu1 }
0x1a66   :  { %v1340_v40 = vrot.slane %v1335_v39, 6  ;;  %v2444_v41 = vpop.f32.mrb[11].mxu1 }
0x1a68   :  { %v1342_v42 = vadd.f32 %v1340_v40, %v3199_v21 }
0x1a6a   :  { %2724 = vtanh.f32 %v1342_v42  ;;  %v2208_v44 = vmul.f32 -1.442695, %v1342_v42 }
0x1a6c   :  { %2726 = vpow2.f32 %v2208_v44 }
0x1a74   :  { %v2725_v43 = vpop.eup %2724 }
0x1a75   :  { %1355 = vrot.lane.b32.xlu1 %v2725_v43, %s2909_s0 }
0x1a76   :  { %v2727_v45 = vpop.eup %2726 }
0x1a77   :  { %v1346_v46 = vadd.f32 1.0, %v2727_v45 }
0x1a79   :  { %2728 = vrcp.f32 %v1346_v46 }
0x1a83   :  { %v2729_v47 = vpop.eup %2728 }
0x1a84   :  { %v1353_v51 = vmul.f32 %v2729_v47, %v1351_v50 }
0x1ae7   :  { %v1356_v48 = vpop.permute.xlu1 %1355 }
0x1ae8   :  { %v1358_v49 = vmul.f32 %v2729_v47, %v1356_v48 }
0x1aea   :  { %1360 = vrot.lane.b32.xlu0 %v1358_v49, %s2910_s15 }
0x1b5c   :  { %v1361_v22 = vpop.permute.xlu0 %1360 }
0x1b5d   :  { %v1363_v52 = vadd.f32 %v1361_v22, %v1353_v51 }
0x1b5f   :  { %2730 = vtanh.f32 %v1363_v52  ;;  %v1462_v7 = vrot.slane %v1363_v52, 6 }
0x1b69   :  { %v2731_v53 = vpop.eup %2730 }
0x1b6a   :  { %1366 = vrot.lane.b32.xlu1 %v2731_v53, %s2909_s0 }
0x1bdc   :  { %v1367_v55 = vpop.permute.xlu1 %1366 }
0x1bdd   :  { %v3218_v56 = vmul.f32 %v2729_v47, %v1367_v55 }
0x1bdf   :  { %v1375_v57 = vrot.slane %v3218_v56, 2 }
0x1be1   :  { %1376 = vrot.lane.b32.xlu0 %v1375_v57, %s2910_s15 }
0x1c53   :  { %v1377_v38 = vpop.permute.xlu0 %1376 }
0x1c54   :  { %2454 = vmatmul.mubr.msk.f32.vlgmr.msra.gmra.mrb[12].mxu0 %vm184_vm6, %v1377_v38 }
0x1c55   :  { %2604 = vmatpush3.bf16.msra.mxu0 %v3162_v0  ;;  %2475 = vmatprep.mubr.msk.f32.mxu0 %vm2907_vm1, %v2908_v11 }
0x1c56   :  { %2605 = vmatprep.subr.bf16.mxu0 %v2906_v3 }
0x1c59   :  { %2607 = vmatpush3.bf16.msra.mxu0 %v3171_v4 }
0x1c5a   :  { %2614 = vmatprep.subr.bf16.mxu0 %v2906_v3 }
0x1d27   :  { %v1446_v58 = vpop.f32.mrb[12].mxu0 }
0x1d28   :  { %v1451_v59 = vrot.slane %v1446_v58, 4  ;;  %v2455_v60 = vpop.f32.mrb[13].mxu0 }
0x1d2a   :  { %v1453_v61 = vadd.f32 %v1451_v59, %v3199_v21 }
0x1d2c   :  { %2732 = vtanh.f32 %v1453_v61  ;;  %v2210_v63 = vmul.f32 -1.442695, %v1453_v61 }
0x1d2e   :  { %2734 = vpow2.f32 %v2210_v63 }
0x1d36   :  { %v2733_v62 = vpop.eup %2732 }
0x1d37   :  { %1466 = vrot.lane.b32.xlu1 %v2733_v62, %s2909_s0 }
0x1d38   :  { %v2735_v17 = vpop.eup %2734 }
0x1d39   :  { %v1457_v1 = vadd.f32 1.0, %v2735_v17 }
0x1d3b   :  { %2736 = vrcp.f32 %v1457_v1 }
0x1d45   :  { %v2737_v6 = vpop.eup %2736 }
0x1d46   :  { %v1464_v10 = vmul.f32 %v2737_v6, %v1462_v7 }
0x1da9   :  { %v1467_v2 = vpop.permute.xlu1 %1466 }
0x1daa   :  { %v1469_v5 = vmul.f32 %v2737_v6, %v1467_v2 }
0x1dac   :  { %1471 = vrot.lane.b32.xlu0 %v1469_v5, %s2910_s15 }
0x1e1e   :  { %v1472_v8 = vpop.permute.xlu0 %1471 }
0x1e1f   :  { %v1474_v9 = vadd.f32 %v1472_v8, %v1464_v10 }
0x1e21   :  { %2738 = vtanh.f32 %v1474_v9  ;;  %v1573_v33 = vrot.slane %v1474_v9, 6 }
0x1e2b   :  { %v2739_v12 = vpop.eup %2738 }
0x1e2c   :  { %1477 = vrot.lane.b32.xlu1 %v2739_v12, %s2909_s0 }
0x1e9e   :  { %v1478_v13 = vpop.permute.xlu1 %1477 }
0x1e9f   :  { %v3233_v14 = vmul.f32 %v2737_v6, %v1478_v13 }
0x1ea1   :  { %v1486_v15 = vrot.slane %v3233_v14, 4 }
0x1ea3   :  { %1487 = vrot.lane.b32.xlu0 %v1486_v15, %s2910_s15 }
0x1f15   :  { %v1488_v16 = vpop.permute.xlu0 %1487 }
0x1f16   :  { %2465 = vmatmul.mubr.msk.f32.vlgmr.msra.gmra.mrb[12].mxu1 %vm184_vm6, %v1488_v16 }
0x1f17   :  { %2610 = vmatpush3.bf16.msra.mxu1 %v3162_v0  ;;  %2486 = vmatprep.mubr.msk.f32.mxu1 %vm2907_vm1, %v2908_v11 }
0x1f18   :  { %2611 = vmatprep.subr.bf16.mxu1 %v2906_v3 }
0x1f1b   :  { %2613 = vmatpush3.bf16.msra.mxu1 %v3171_v4 }
0x1f1c   :  { %2620 = vmatprep.subr.bf16.mxu1 %v2906_v3 }
0x1fe9   :  { %v1557_v18 = vpop.f32.mrb[12].mxu1 }
0x1fea   :  { %v1562_v20 = vrot.slane %v1557_v18, 2  ;;  %v2466_v23 = vpop.f32.mrb[13].mxu1 }
0x1fec   :  { %v1564_v25 = vadd.f32 %v1562_v20, %v3199_v21 }
0x1fee   :  { %2740 = vtanh.f32 %v1564_v25  ;;  %v2212_v27 = vmul.f32 -1.442695, %v1564_v25 }
0x1ff0   :  { %2742 = vpow2.f32 %v2212_v27 }
0x1ff8   :  { %v2741_v26 = vpop.eup %2740 }
0x1ff9   :  { %1577 = vrot.lane.b32.xlu1 %v2741_v26, %s2909_s0 }
0x1ffa   :  { %v2743_v28 = vpop.eup %2742 }
0x1ffb   :  { %v1568_v29 = vadd.f32 1.0, %v2743_v28 }
0x1ffd   :  { %2744 = vrcp.f32 %v1568_v29 }
0x2007   :  { %v2745_v30 = vpop.eup %2744 }
0x2008   :  { %v1575_v34 = vmul.f32 %v2745_v30, %v1573_v33 }
0x206b   :  { %v1578_v31 = vpop.permute.xlu1 %1577 }
0x206c   :  { %v1580_v32 = vmul.f32 %v2745_v30, %v1578_v31 }
0x206e   :  { %1582 = vrot.lane.b32.xlu0 %v1580_v32, %s2910_s15 }
0x20e0   :  { %v1583_v35 = vpop.permute.xlu0 %1582 }
0x20e1   :  { %v1585_v36 = vadd.f32 %v1583_v35, %v1575_v34 }
0x20e3   :  { %2746 = vtanh.f32 %v1585_v36  ;;  %v1681_v51 = vrot.slane %v1585_v36, 6 }
0x20ed   :  { %v2747_v21 = vpop.eup %2746 }
0x20ee   :  { %1588 = vrot.lane.b32.xlu1 %v2747_v21, %s2909_s0 }
0x2160   :  { %v1589_v24 = vpop.permute.xlu1 %1588 }
0x2161   :  { %v3248_v37 = vmul.f32 %v2745_v30, %v1589_v24 }
0x2163   :  { %v1597_v39 = vrot.slane %v3248_v37, 6 }
0x2165   :  { %1598 = vrot.lane.b32.xlu0 %v1597_v39, %s2910_s15 }
0x21d7   :  { %v1599_v40 = vpop.permute.xlu0 %1598 }
0x21d8   :  { %2476 = vmatmul.mubr.msk.f32.vlgmr.msra.gmra.mrb[14].mxu0 %vm184_vm6, %v1599_v40 }
0x21d9   :  { %2616 = vmatpush3.bf16.msra.mxu0 %v3162_v0  ;;  %2497 = vmatprep.mubr.msk.f32.mxu0 %vm2907_vm1, %v2908_v11 }
0x21da   :  { %2617 = vmatprep.subr.bf16.mxu0 %v2906_v3 }
0x21dd   :  { %2619 = vmatpush3.bf16.msra.mxu0 %v3171_v4 }
0x22ab   :  { %v1668_v41 = vpop.f32.mrb[14].mxu0 }
0x22ac   :  { %v1672_v42 = vadd.f32 %v1668_v41, %v3197_v19  ;;  %v2477_v43 = vpop.f32.mrb[15].mxu0 }
0x22ae   :  { %2748 = vtanh.f32 %v1672_v42  ;;  %v2214_v45 = vmul.f32 -1.442695, %v1672_v42 }
0x22b0   :  { %2750 = vpow2.f32 %v2214_v45 }
0x22b8   :  { %v2749_v44 = vpop.eup %2748 }
0x22b9   :  { %1685 = vrot.lane.b32.xlu1 %v2749_v44, %s2909_s0 }
0x22ba   :  { %v2751_v46 = vpop.eup %2750 }
0x22bb   :  { %v1676_v47 = vadd.f32 1.0, %v2751_v46 }
0x22bd   :  { %2752 = vrcp.f32 %v1676_v47 }
0x22c7   :  { %v2753_v48 = vpop.eup %2752 }
0x22c8   :  { %v1683_v22 = vmul.f32 %v2753_v48, %v1681_v51 }
0x232b   :  { %v1686_v49 = vpop.permute.xlu1 %1685 }
0x232c   :  { %v1688_v50 = vmul.f32 %v2753_v48, %v1686_v49 }
0x232e   :  { %1690 = vrot.lane.b32.xlu0 %v1688_v50, %s2910_s15 }
0x23a0   :  { %v1691_v52 = vpop.permute.xlu0 %1690 }
0x23a1   :  { %v1693_v53 = vadd.f32 %v1691_v52, %v1683_v22 }
0x23a3   :  { %2754 = vtanh.f32 %v1693_v53 }
0x23ad   :  { %v2755_v55 = vpop.eup %2754 }
0x23ae   :  { %1696 = vrot.lane.b32.xlu1 %v2755_v55, %s2909_s0 }
0x2420   :  { %v1697_v57 = vpop.permute.xlu1 %1696 }
0x2421   :  { %v1699_v38 = vmul.f32 %v2753_v48, %v1697_v57 }
0x2423   :  { %1701 = vrot.lane.b32.xlu0 %v1699_v38, %s2910_s15  ;;  %v2046_v38 = vld [vmem:[%s3367_s5 + $0x8] sm:$0xff] }
0x2495   :  { %v1702_v58 = vpop.permute.xlu0 %1701 }
0x2496   :  { %1704 = vst.msk [vmem:[#allocation2 + $0x8] sm:$0x3] %vm287_vm5, %v1702_v58  ;;  %2487 = vmatmul.mubr.msk.f32.vlgmr.msra.gmra.mrb[14].mxu1 %vm184_vm6, %v1702_v58 }
0x2497   :  { %2622 = vmatpush3.bf16.msra.mxu1 %v3162_v0  ;;  %2508 = vmatprep.mubr.msk.f32.mxu1 %vm2907_vm1, %v2908_v11 }
0x2498   :  { %2623 = vmatprep.subr.bf16.mxu1 %v2906_v3  ;;  %v1789_v3 = vrot.slane %v1693_v53, 6 }
0x249b   :  { %2625 = vmatpush3.bf16.msra.mxu1 %v3171_v4 }
0x2569   :  { %v1773_v59 = vpop.f32.mrb[14].mxu1 }
0x256a   :  { %v1778_v60 = vrot.slane %v1773_v59, 6  ;;  %v2488_v61 = vpop.f32.mrb[15].mxu1  ;;  %v2047_v59 = vld [vmem:[%s3367_s5 + $0x10] sm:$0xff] }
0x256c   :  { %v1780_v62 = vadd.f32 %v1778_v60, %v3197_v19 }
0x256e   :  { %2756 = vtanh.f32 %v1780_v62  ;;  %v2216_v17 = vmul.f32 -1.442695, %v1780_v62 }
0x2570   :  { %2758 = vpow2.f32 %v2216_v17 }
0x2578   :  { %v2757_v63 = vpop.eup %2756 }
0x2579   :  { %1793 = vrot.lane.b32.xlu1 %v2757_v63, %s2909_s0 }
0x257a   :  { %v2759_v1 = vpop.eup %2758 }
0x257b   :  { %v1784_v0 = vadd.f32 1.0, %v2759_v1 }
0x257d   :  { %2760 = vrcp.f32 %v1784_v0 }
0x2587   :  { %v2761_v6 = vpop.eup %2760 }
0x2588   :  { %v1791_v4 = vmul.f32 %v2761_v6, %v1789_v3 }
0x25eb   :  { %v1794_v11 = vpop.permute.xlu1 %1793 }
0x25ec   :  { %v1796_v2 = vmul.f32 %v2761_v6, %v1794_v11 }
0x25ee   :  { %1798 = vrot.lane.b32.xlu0 %v1796_v2, %s2910_s15 }
0x2660   :  { %v1799_v5 = vpop.permute.xlu0 %1798 }
0x2661   :  { %v1801_v7 = vadd.f32 %v1799_v5, %v1791_v4 }
0x2663   :  { %2762 = vtanh.f32 %v1801_v7  ;;  %v1900_v31 = vrot.slane %v1801_v7, 6 }
0x266d   :  { %v2763_v10 = vpop.eup %2762 }
0x266e   :  { %1804 = vrot.lane.b32.xlu1 %v2763_v10, %s2909_s0 }
0x26e0   :  { %v1805_v8 = vpop.permute.xlu1 %1804 }
0x26e1   :  { %v3274_v9 = vmul.f32 %v2761_v6, %v1805_v8 }
0x26e3   :  { %v1813_v12 = vrot.slane %v3274_v9, 2 }
0x26e5   :  { %1814 = vrot.lane.b32.xlu0 %v1813_v12, %s2910_s15 }
0x2757   :  { %v1815_v13 = vpop.permute.xlu0 %1814 }
0x2758   :  { %2498 = vmatmul.mubr.msk.f32.vlgmr.msra.gmra.mrb[16].mxu0 %vm184_vm6, %v1815_v13 }
0x282b   :  { %v1884_v15 = vpop.f32.mrb[16].mxu0 }
0x282c   :  { %v1889_v16 = vrot.slane %v1884_v15, 4  ;;  %v2499_v18 = vpop.f32.mrb[17].mxu0 }
0x282e   :  { %v1891_v20 = vadd.f32 %v1889_v16, %v3197_v19 }
0x2830   :  { %2764 = vtanh.f32 %v1891_v20  ;;  %v2218_v25 = vmul.f32 -1.442695, %v1891_v20 }
0x2832   :  { %2766 = vpow2.f32 %v2218_v25 }
0x283a   :  { %v2765_v23 = vpop.eup %2764 }
0x283b   :  { %1904 = vrot.lane.b32.xlu1 %v2765_v23, %s2909_s0 }
0x283c   :  { %v2767_v26 = vpop.eup %2766 }
0x283d   :  { %v1895_v27 = vadd.f32 1.0, %v2767_v26 }
0x283f   :  { %2768 = vrcp.f32 %v1895_v27 }
0x2849   :  { %v2769_v28 = vpop.eup %2768 }
0x284a   :  { %v1902_v32 = vmul.f32 %v2769_v28, %v1900_v31 }
0x28ad   :  { %v1905_v29 = vpop.permute.xlu1 %1904 }
0x28ae   :  { %v1907_v30 = vmul.f32 %v2769_v28, %v1905_v29 }
0x28b0   :  { %1909 = vrot.lane.b32.xlu0 %v1907_v30, %s2910_s15 }
0x2922   :  { %v1910_v33 = vpop.permute.xlu0 %1909 }
0x2923   :  { %v1912_v34 = vadd.f32 %v1910_v33, %v1902_v32 }
0x2925   :  { %2770 = vtanh.f32 %v1912_v34 }
0x292f   :  { %v2771_v35 = vpop.eup %2770 }
0x2930   :  { %1915 = vrot.lane.b32.xlu1 %v2771_v35, %s2909_s0 }
0x29a2   :  { %v1916_v36 = vpop.permute.xlu1 %1915 }
0x29a3   :  { %v1918_v21 = vmul.f32 %v2769_v28, %v1916_v36 }
0x29a5   :  { %v1924_v24 = vrot.slane %v1918_v21, 4 }
0x29a7   :  { %1925 = vrot.lane.b32.xlu0 %v1924_v24, %s2910_s15 }
0x2a19   :  { %v1926_v39 = vpop.permute.xlu0 %1925 }
0x2a1a   :  { %2509 = vmatmul.mubr.msk.f32.vlgmr.msra.gmra.mrb[16].mxu1 %vm184_vm6, %v1926_v39 }
0x2aed   :  { %v1995_v40 = vpop.f32.mrb[16].mxu1 }
0x2aee   :  { %v2000_v41 = vrot.slane %v1995_v40, 2  ;;  %v2510_v42 = vpop.f32.mrb[17].mxu1 }
0x2af0   :  { %v2002_v43 = vadd.f32 %v2000_v41, %v3197_v19  ;;  %v2011_v19 = vrot.slane %v1912_v34, 6 }
0x2af2   :  { %2772 = vtanh.f32 %v2002_v43  ;;  %v2220_v45 = vmul.f32 -1.442695, %v2002_v43 }
0x2af4   :  { %2774 = vpow2.f32 %v2220_v45 }
0x2afc   :  { %v2773_v44 = vpop.eup %2772 }
0x2afd   :  { %2015 = vrot.lane.b32.xlu1 %v2773_v44, %s2909_s0 }
0x2afe   :  { %v2775_v46 = vpop.eup %2774 }
0x2aff   :  { %v2006_v47 = vadd.f32 1.0, %v2775_v46 }
0x2b01   :  { %2776 = vrcp.f32 %v2006_v47 }
0x2b0b   :  { %v2777_v48 = vpop.eup %2776 }
0x2b0c   :  { %v2013_v51 = vmul.f32 %v2777_v48, %v2011_v19 }
0x2b6f   :  { %v2016_v49 = vpop.permute.xlu1 %2015 }
0x2b70   :  { %v2018_v50 = vmul.f32 %v2777_v48, %v2016_v49 }
0x2b72   :  { %2020 = vrot.lane.b32.xlu0 %v2018_v50, %s2910_s15 }
0x2b76   :  { %1371 = vrot.lane.b32.xlu0 %v3218_v56, %s2910_s15 }
0x2b7a   :  { %1593 = vrot.lane.b32.xlu0 %v3248_v37, %s2910_s15 }
0x2b7e   :  { %1920 = vrot.lane.b32.xlu0 %v1918_v21, %s2910_s15 }
0x2b82   :  { %1062 = vrot.lane.b32.xlu0 %v3145_v54, %s2911_s3  ;;  %v2045_v54 = vld [vmem:[%s3367_s5] sm:$0xff] }
0x2b83   :  { %v2626_v58 = vpack.c.bf16 %v2046_v38, %v2045_v54 }
0x2b85   :  { %2627 = vmatprep.subr.bf16.mxu0 %v2626_v58 }
0x2b86   :  { %2629 = vmatpush3.bf16.msra.mxu0 %v2626_v58 }
0x2be4   :  { %v2021_v22 = vpop.permute.xlu0 %2020 }
0x2be5   :  { %v2023_v52 = vadd.f32 %v2021_v22, %v2013_v51 }
0x2be7   :  { %2778 = vtanh.f32 %v2023_v52 }
0x2be8   :  { %v1372_v53 = vpop.permute.xlu0 %1371 }
0x2be9   :  { %1374 = vst.msk [vmem:[#allocation2] sm:$0xc] %vm396_vm7, %v1372_v53 }
0x2bec   :  { %v1594_v55 = vpop.permute.xlu0 %1593 }
0x2bed   :  { %1596 = vst.msk [vmem:[#allocation2] sm:$0xc0] %vm620_vm8, %v1594_v55 }
0x2bf0   :  { %v1921_v56 = vpop.permute.xlu0 %1920 }
0x2bf1   :  { %v2779_v57 = vpop.eup %2778  ;;  %1923 = vst.msk [vmem:[#allocation2 + $0x8] sm:$0x30] %vm508_vm9, %v1921_v56 }
0x2bf2   :  { %2026 = vrot.lane.b32.xlu1 %v2779_v57, %s2909_s0 }
0x2bf4   :  { %v1063_v37 = vpop.permute.xlu0 %1062 }
0x2bf5   :  { %1065 = vst.msk [vmem:[#allocation10 - $0x6] sm:$0xc0] %vm620_vm8, %v1063_v37 }
0x2bf6   :  { %1482 = vrot.lane.b32.xlu1 %v3233_v14, %s2910_s15  ;;  %v2048_v14 = vld [vmem:[%s3367_s5 + $0x18] sm:$0xff]  ;;  %s2912_s5 = smov [#allocation9]  }
0x2bf7   :  { %v2630_v60 = vpack.c.bf16 %v2048_v14, %v2047_v59  ;;  %s2147_s4 = sshll.u32 %s2912_s5, 4  ;;  %s2148_s4 = int_to_ptr.vmem [resolvable:$true] %s2147_s4 }
0x2bf8   :  { %s2846_s13 = scalar_lea.vmem %s2148_s4, 64  ;;  %p2851_p11 = scmp.lt.s32.totalorder %s2148_s4, %s2148_s4 }
0x2bf9   :  { %2631 = vmatprep.subr.bf16.mxu0 %v2630_v60  ;;  %p2847_p10 = scmp.ne.s32.totalorder %s2148_s4, %s2846_s13  ;;  %p2852_p12 = scmp.lt.s32.totalorder %s2846_s13, %s2846_s13 }
0x2bfa   :  { %1809 = vrot.lane.b32.xlu1 %v3274_v9, %s2910_s15  ;;  %2633 = vmatpush3.bf16.msra.mxu0 %v2630_v60 }
0x2bfb   :  { %p2853_p13 = por %p2852_p12, %p2851_p11 }
0x2bfd   :  { %p2854_p0 = pnand %p2853_p13, %p2847_p10 }
0x2c64   :  { %v2027_v61 = vpop.permute.xlu1 %2026 }
0x2c65   :  { %v2029_v62 = vmul.f32 %v2777_v48, %v2027_v61 }
0x2c67   :  { %2031 = vrot.lane.b32.xlu1 %v2029_v62, %s2910_s15 }
0x2c68   :  { %v1483_v63 = vpop.permute.xlu1 %1482 }
0x2c69   :  { %1485 = vst.msk [vmem:[#allocation2] sm:$0x30] %vm508_vm9, %v1483_v63 }
0x2c6b   :  { %2038 = vrot.lane.b32.xlu1 %v2023_v52, %s2911_s3 }
0x2c6c   :  { %v1810_v17 = vpop.permute.xlu1 %1809 }
0x2c6d   :  { %1812 = vst.msk [vmem:[#allocation2 + $0x8] sm:$0xc] %vm396_vm7, %v1810_v17 }
0x2c70   :  { %v2043_v1 = vld [vmem:[#allocation2] sm:$0xff] }
0x2c71   :  { %2519 = vmatprep.mubr.msk.f32.mxu0 %vm184_vm6, %v2043_v1 }
0x2cd9   :  { %v2032_v0 = vpop.permute.xlu1 %2031 }
0x2cda   :  { %2034 = vst.msk [vmem:[#allocation2 + $0x8] sm:$0xc0] %vm620_vm8, %v2032_v0  ;;  %2036 = vst.msk [vmem:[#allocation9 - $0x4] sm:$0xc0] %vm620_vm8, %v2032_v0 }
0x2cdd   :  { %v2039_v6 = vpop.permute.xlu1 %2038 }
0x2cde   :  { %2042 = vst.msk [vmem:[#allocation10 - $0x4] sm:$0xc0] %vm620_vm8, %v2039_v6 }
0x2ce1   :  { %v2044_v11 = vld [vmem:[#allocation2 + $0x8] sm:$0xff] }
0x2ce2   :  { %2520 = vmatmul.mubr.msk.f32.vlgmr.msra.gmra.mrb[18].mxu0 %vm184_vm6, %v2044_v11 }
0x2ce3   :  { %2857 = shalt.err (!%p2854_p0)
}
0x2ce4   :  { %s2858_s14 = scalar_lea.hbm %s3370_s8, 64 }
0x2ce5   :  { %p2859_p1 = scmp.ne.s32.totalorder %s3370_s8, %s2858_s14  ;;  %p2862_p2 = scmp.lt.u32.totalorder %s2858_s14, %s3370_s8 }
0x2ce7   :  { %p2864_p3 = pnand %p2862_p2, %p2859_p1 }
0x2ce9   :  { %2867 = shalt.err (!%p2864_p3)
}
0x2cea   :  { %s2914_s19 = smov 2   ;;  %s2868_s22 = scalar_lea.vmem %s2160_s12, 64 }
0x2ceb   :  { %2153 = dma.vmem_to_hbm [thread:$0]  %s2148_s4, 64, %s3370_s8, [#allocation5], %s2910_s15, %s2910_s15, %s2914_s19  }
0x2cec   :  { %p2869_p4 = scmp.ne.s32.totalorder %s2160_s12, %s2868_s22  ;;  %p2873_p5 = scmp.lt.s32.totalorder %s2160_s12, %s2160_s12 }
0x2ced   :  { %p2874_p6 = scmp.lt.s32.totalorder %s2868_s22, %s2868_s22 }
0x2cef   :  { %p2875_p7 = por %p2874_p6, %p2873_p5 }
0x2cf1   :  { %p2876_p8 = pnand %p2875_p7, %p2869_p4 }
0x2cf3   :  { %2879 = shalt.err (!%p2876_p8)
}
0x2cf4   :  { %s2880_s23 = scalar_lea.hbm %s3371_s9, 64 }
0x2cf5   :  { %p2881_p9 = scmp.ne.s32.totalorder %s3371_s9, %s2880_s23  ;;  %p2884_p10 = scmp.lt.u32.totalorder %s2880_s23, %s3371_s9 }
0x2cf7   :  { %p2886_p11 = pnand %p2884_p10, %p2881_p9 }
0x2cf9   :  { %2889 = shalt.err (!%p2886_p11)
}
0x2cfa   :  { %2165 = dma.vmem_to_hbm [thread:$0]  %s2160_s12, 64, %s3371_s9, [#allocation11], %s2910_s15, %s2910_s15, %s2914_s19   ;;  %vm2137_vm10 = vcmask 31744  }
0x2cfb   :  { %v2221_v2 = vld [vmem:[%s3368_s6] ss:$0 sm:$0xff] }
0x2db5   :  { %v2521_v3 = vpop.f32.mrb[18].mxu0 }
0x2db6   :  { %v2134_v4 = vadd.f32 %v2521_v3, %v2221_v2  ;;  %v2128_v5 = vpop.f32.mrb[19].mxu0 }
0x2db7   :  { %v2129_v7 = vadd.f32 %v2221_v2, %v2128_v5 }
0x2db8   :  { %2139 = vst.msk [vmem:[%s3369_s7 + $0x8] sm:$0xff] %vm2137_vm10, %v2134_v4 }
0x2db9   :  { %2138 = vst.msk [vmem:[%s3369_s7] sm:$0xff] %vm2137_vm10, %v2129_v7 }
0x2dba   :  { %2894 = dma.done.wait [#allocation5], 64  }
0x2dbb   :  { %2895 = vsyncadd [#allocation5], 4294967232 }
0x2dbc   :  { %2896 = dma.done.wait [#allocation11], 64  }
0x2dbd   :  { %2897 = vsyncadd [#allocation11], 4294967232 }
0x2dbe   :  { %2174 = vsyncpa [#allocation4], 1 }
0x2dbf   :  { %2175 = vsyncpa [#allocation7], 1 }
0x2dc0   :  { %2176 = vsyncpa [#allocation5], 1 }
0x2dc1   :  { %2177 = vsyncpa [#allocation11], 1 }

</bundles_post_ra>
